<compile_context>
chip_gen: v7x
topology: tpu7x:2x2x1
jax: 0.10.0
libtpu: 0.0.40
codegen_flags: <defaults>
</compile_context>

<pallas_src>
import math
from functools import partial

import jax
import jax.numpy as jnp
from jax import lax
from jax.experimental import pallas as pl
from jax.experimental.pallas import tpu as pltpu


def _conv3d_kernel(x_ref, scale_ref, shift_ref, w_ref, b_ref, o_ref,
                   xpad_ref, lhs_ref, *,
                   kt, kh, D, H, Hp, Dp, pf, pb, ph, Do, Ho,
                   WC_pad, WCout_pad):
    """One batch element per grid step.

    x_ref:     (1, D, Hp, WC_pad)  raw input, (N,D,Hp,W*Cin) layout, zero
                                   padded on H, on the W lanes and up to the
                                   128-lane boundary (NOT BN'd yet).
    scale_ref: (1, WC_pad)         BN scale per lane (0 on padded lanes)
    shift_ref: (1, WC_pad)         BN shift per lane (0 on padded lanes)
    w_ref:     (kt, kh*WC_pad, WCout_pad)  banded weights (kh, kw, Cin folded
                                   into K; Wo, Cout folded into lane-dense N)
    b_ref:     (1, WCout_pad)      bias tiled to the lane-dense output layout
    o_ref:     (1, Do*Ho, WCout_pad)
    xpad_ref:  VMEM (Dp, Hp, WC_pad)     BN+ReLU'd, depth-replicated input
    lhs_ref:   VMEM (Dp*Ho, kh*WC_pad)   full-depth matmul LHS slab
    """
    # ---- 1) BN + ReLU (+ zero mask for padded H rows), fused with the copy
    #         into the depth-padded scratch -------------------------------
    x = x_ref[0]                                            # (D, Hp, WC_pad)
    scale = scale_ref[...].reshape(1, 1, WC_pad)
    shift = shift_ref[...].reshape(1, 1, WC_pad)
    y = jnp.maximum(x * scale + shift, 0.0)
    if ph > 0:
        h_idx = lax.broadcasted_iota(jnp.int32, (Hp, 1), 0)
        y = jnp.where((h_idx >= ph) & (h_idx < ph + H), y, 0.0)
    xpad_ref[pl.ds(pf, D)] = y
    # ReplicationPad3d on the depth axis (front pf rows, back pb rows).
    for i in range(pf):
        xpad_ref[i] = xpad_ref[pf]
    for i in range(pb):
        xpad_ref[pf + D + i] = xpad_ref[pf + D - 1]

    # ---- 2) assemble the full-depth LHS once: kh lane-aligned sub-slabs ---
    #   row (d*Ho + ho), lane block ih   <-   xpad[d, ih + ho, :]
    for ih in range(kh):
        slab = xpad_ref[:, pl.ds(ih, Ho), :]                # (Dp, Ho, WC_pad)
        lhs_ref[:, ih * WC_pad:(ih + 1) * WC_pad] = (
            slab.reshape(Dp * Ho, WC_pad).astype(lhs_ref.dtype))

    # ---- 3) kt fat-K MXU matmuls; per tap the LHS is a contiguous row range
    acc = jnp.zeros((Do * Ho, WCout_pad), jnp.float32)
    for it in range(kt):
        acc = acc + jnp.dot(lhs_ref[pl.ds(it * Ho, Do * Ho), :], w_ref[it],
                            preferred_element_type=jnp.float32)
    acc = acc + b_ref[...]                                  # (1, WCout_pad)
    o_ref[...] = acc.reshape(1, Do * Ho, WCout_pad).astype(o_ref.dtype)


def make_conv_bn_relu_3d(weight, bias, gamma, beta, running_mean, running_var,
                         *, kernel_size, stride=1, padding=(0, 0), eps=1e-5,
                         spatial_shape, training=False,
                         matmul_dtype=jnp.float32):
    """Returns a jitted forward(x) for ConvBnRelu3D.

    All shape/parameter-dependent constants (banded weights, lane-tiled bias,
    BN lane vectors) are precomputed here once per parameter update instead of
    per forward call.

    weight: (Cout, Cin, kt, kh, kw);  bias: (Cout,);  BN params: (Cin,)
    spatial_shape: (D, H, W) of the inputs this forward will see.
    matmul_dtype: jnp.float32 (default, bit-accurate) or jnp.bfloat16 for
      ~2-3x MXU throughput at larger shapes (needs looser tolerances).
    """
    kt, kh, kw = kernel_size
    ph, pw = padding
    if stride != 1:
        # TODO(synk): strided Conv3d not implemented in the Pallas kernel.
        raise NotImplementedError("stride != 1 not supported")

    D, H, W = spatial_shape
    Cout, Cin = weight.shape[0], weight.shape[1]

    tp = (kt - 1) / 2
    pf, pb = int(math.floor(tp)), int(math.ceil(tp))
    Dp, Hp, Wp = D + pf + pb, H + 2 * ph, W + 2 * pw
    Do, Ho, Wo = Dp - kt + 1, Hp - kh + 1, Wp - kw + 1
    WCin, WCout = Wp * Cin, Wo * Cout
    WC_pad = 128 * pl.cdiv(WCin, 128)       # lane-align folded (W, Cin) axis
    WCout_pad = 128 * pl.cdiv(WCout, 128)   # lane-dense output axis

    # ---- banded weights: one (kh*WC_pad, WCout_pad) matrix per kt tap ------
    # M[it, ih*WC_pad + p*Cin + ci, w*Cout + co] = weight[co, ci, it, ih, p-w]
    w_t = jnp.transpose(weight, (2, 3, 4, 1, 0)).astype(jnp.float32)  # (kt,kh,kw,Cin,Cout)
    band = (jnp.arange(Wp)[:, None, None]
            == jnp.arange(Wo)[None, :, None] + jnp.arange(kw)[None, None, :]
            ).astype(jnp.float32)                                      # (Wp,Wo,kw)
    w_band = jnp.einsum("pwk,thkio->thpiwo", band, w_t)
    w_band = w_band.reshape(kt, kh, WCin, WCout)
    w_band = jnp.pad(w_band, ((0, 0), (0, 0),
                              (0, WC_pad - WCin), (0, WCout_pad - WCout)))
    w_band = w_band.reshape(kt, kh * WC_pad, WCout_pad).astype(matmul_dtype)
    b_lane = jnp.pad(jnp.tile(bias.astype(jnp.float32), Wo),
                     (0, WCout_pad - WCout)).reshape(1, WCout_pad)

    # ---- BN scale/shift as per-lane vectors over the folded (Wp, Cin) axis;
    #      zero at the W zero-pad lanes and at the lane-pad tail so the conv's
    #      H/W zero padding is reproduced after in-kernel BN+ReLU. -----------
    w_valid = (jnp.arange(Wp) >= pw) & (jnp.arange(Wp) < pw + W)       # (Wp,)

    def _lane_vec(v):
        lanes = jnp.where(w_valid[:, None], v[None, :], 0.0).reshape(WCin)
        return jnp.pad(lanes, (0, WC_pad - WCin)).reshape(1, WC_pad)

    if not training:
        scale = gamma * lax.rsqrt(running_var + eps)
        shift = beta - running_mean * scale
        scale_lane_const, shift_lane_const = _lane_vec(scale), _lane_vec(shift)

    kernel = partial(_conv3d_kernel, kt=kt, kh=kh, D=D, H=H, Hp=Hp, Dp=Dp,
                     pf=pf, pb=pb, ph=ph, Do=Do, Ho=Ho,
                     WC_pad=WC_pad, WCout_pad=WCout_pad)

    def _pallas_conv(xt, scale_lane, shift_lane):
        N = xt.shape[0]
        return pl.pallas_call(
            kernel,
            out_shape=jax.ShapeDtypeStruct((N, Do * Ho, WCout_pad), xt.dtype),
            grid_spec=pltpu.PrefetchScalarGridSpec(
                num_scalar_prefetch=0,
                grid=(N,),
                in_specs=[
                    pl.BlockSpec((1, D, Hp, WC_pad), lambda n: (n, 0, 0, 0)),
                    pl.BlockSpec((1, WC_pad), lambda n: (0, 0)),
                    pl.BlockSpec((1, WC_pad), lambda n: (0, 0)),
                    # Constant weight band: block index never changes, so a
                    # single buffer is enough (no 2x VMEM reservation).
                    pl.BlockSpec((kt, kh * WC_pad, WCout_pad),
                                 lambda n: (0, 0, 0),
                                 pipeline_mode=pl.Buffered(1)),
                    pl.BlockSpec((1, WCout_pad), lambda n: (0, 0)),
                ],
                out_specs=pl.BlockSpec((1, Do * Ho, WCout_pad),
                                       lambda n: (n, 0, 0)),
                scratch_shapes=[
                    pltpu.VMEM((Dp, Hp, WC_pad), jnp.float32),
                    pltpu.VMEM((Dp * Ho, kh * WC_pad), matmul_dtype),
                ],
            ),
            compiler_params=pltpu.CompilerParams(
                dimension_semantics=("parallel",)),
        )(xt, scale_lane, shift_lane, w_band, b_lane)

    @jax.jit
    def forward(x):
        N = x.shape[0]
        if training:
            mean = jnp.mean(x, axis=(0, 2, 3, 4))
            var = jnp.mean(jnp.square(x - mean.reshape(1, Cin, 1, 1, 1)),
                           axis=(0, 2, 3, 4))
            s = gamma * lax.rsqrt(var + eps)
            scale_lane, shift_lane = _lane_vec(s), _lane_vec(beta - mean * s)
        else:
            scale_lane, shift_lane = scale_lane_const, shift_lane_const

        # Only wrapper-side data movement: NCDHW -> (N, D, Hp, lanes) with the
        # W zero pad and the 128-lane pad folded into a single jnp.pad.
        xt = jnp.transpose(x, (0, 2, 3, 4, 1)).reshape(N, D, H, W * Cin)
        xt = jnp.pad(xt, ((0, 0), (0, 0), (ph, ph),
                          (pw * Cin, WC_pad - W * Cin - pw * Cin)))

        out = _pallas_conv(xt, scale_lane, shift_lane)
        out = out[:, :, :WCout].reshape(N, Do, Ho, Wo, Cout)
        return jnp.transpose(out, (0, 4, 1, 2, 3))          # back to NCDHW

    return forward


if __name__ == "__main__":
    key = jax.random.PRNGKey(0)
    k1, k2, k3, k4, k5, k6, k7 = jax.random.split(key, 7)

    # ConvBnRelu3D(inChannels=4, outChannels=8, kernelSize=(3,3,3), stride=1,
    #              padding=(1,1))
    N, Cin, Cout = 2, 4, 8
    D, H, W = 8, 16, 16
    kernel_size = (3, 3, 3)
    padding = (1, 1)
    eps = 1e-5

    x = jax.random.normal(k1, (N, Cin, D, H, W), jnp.float32)

    # Conv3d-style uniform init.
    fan_in = Cin * kernel_size[0] * kernel_size[1] * kernel_size[2]
    bound = 1.0 / math.sqrt(fan_in)
    weight = jax.random.uniform(k2, (Cout, Cin) + kernel_size, jnp.float32,
                                minval=-bound, maxval=bound)
    bias = jax.random.uniform(k3, (Cout,), jnp.float32,
                              minval=-bound, maxval=bound)

    # Non-trivial BatchNorm parameters (eval-mode BN).
    gamma = jax.random.uniform(k4, (Cin,), jnp.float32, minval=0.5, maxval=1.5)
    beta = 0.1 * jax.random.normal(k5, (Cin,), jnp.float32)
    running_mean = 0.1 * jax.random.normal(k6, (Cin,), jnp.float32)
    running_var = jax.random.uniform(k7, (Cin,), jnp.float32,
                                     minval=0.5, maxval=1.5)

    forward = make_conv_bn_relu_3d(
        weight, bias, gamma, beta, running_mean, running_var,
        kernel_size=kernel_size, stride=1, padding=padding, eps=eps,
        spatial_shape=(D, H, W), training=False)

    out = jax.block_until_ready(forward(x))

    # ---- pure-JAX reference: BN(eval) -> ReLU -> rep-pad depth -> Conv3d ----
    scale = gamma / jnp.sqrt(running_var + eps)
    shift = beta - running_mean * scale
    xb = jnp.maximum(x * scale.reshape(1, Cin, 1, 1, 1)
                     + shift.reshape(1, Cin, 1, 1, 1), 0.0)
    tp = (kernel_size[0] - 1) / 2
    pf, pb = int(math.floor(tp)), int(math.ceil(tp))
    x_pad = jnp.pad(xb, ((0, 0), (0, 0), (pf, pb), (0, 0), (0, 0)), mode="edge")
    ref = lax.conv_general_dilated(
        x_pad, weight, window_strides=(1, 1, 1),
        padding=((0, 0), (padding[0], padding[0]), (padding[1], padding[1])),
        dimension_numbers=("NCDHW", "OIDHW", "NCDHW"),
    ) + bias.reshape(1, Cout, 1, 1, 1)

    assert out.shape == (N, Cout, D, H, W), out.shape
    err = float(jnp.max(jnp.abs(out - ref)))
    assert jnp.allclose(out, ref, atol=1e-4, rtol=1e-4), err
    print("KERNEL_OK")
</pallas_src>

<mosaic_0001>
module attributes {stable_mosaic.version = 11 : i64} {
  func.func @_conv3d_kernel(%arg0: i32, %arg1: memref<1x8x18x128xf32, #tpu.memory_space<vmem>>, %arg2: memref<1x128xf32, #tpu.memory_space<vmem>>, %arg3: memref<1x128xf32, #tpu.memory_space<vmem>>, %arg4: memref<3x384x128xf32, #tpu.memory_space<vmem>>, %arg5: memref<1x128xf32, #tpu.memory_space<vmem>>, %arg6: memref<1x128x128xf32, #tpu.memory_space<vmem>>, %arg7: memref<10x18x128xf32, #tpu.memory_space<vmem>>, %arg8: memref<160x384xf32, #tpu.memory_space<vmem>>) attributes {dimension_semantics = [#tpu.dimension_semantics<parallel>], iteration_bounds = array<i64: 2>, scalar_prefetch = 0 : i64, scratch_operands = 2 : i64, tpu.core_type = #tpu.core_type<tc>, window_params = [{transform_indices = @transform_0, window_bounds = array<i64: 1, 8, 18, 128>}, {pipeline_mode = #tpu.pipeline_mode<synchronous>, transform_indices = @transform_1, window_bounds = array<i64: 1, 128>}, {pipeline_mode = #tpu.pipeline_mode<synchronous>, transform_indices = @transform_2, window_bounds = array<i64: 1, 128>}, {pipeline_mode = #tpu.pipeline_mode<synchronous>, transform_indices = @transform_3, window_bounds = array<i64: 3, 384, 128>}, {pipeline_mode = #tpu.pipeline_mode<synchronous>, transform_indices = @transform_4, window_bounds = array<i64: 1, 128>}, {transform_indices = @transform_5, window_bounds = array<i64: 1, 128, 128>}]} {
    %c0 = arith.constant 0 : index
    %c0_0 = arith.constant 0 : index
    %c0_1 = arith.constant 0 : index
    %c0_2 = arith.constant 0 : index
    %0 = vector.load %arg1[%c0, %c0_0, %c0_1, %c0_2] : memref<1x8x18x128xf32, #tpu.memory_space<vmem>>, vector<1x8x18x128xf32>
    %1 = vector.shape_cast %0 : vector<1x8x18x128xf32> to vector<8x18x128xf32>
    %c0_3 = arith.constant 0 : index
    %c0_4 = arith.constant 0 : index
    %2 = vector.load %arg2[%c0_3, %c0_4] : memref<1x128xf32, #tpu.memory_space<vmem>>, vector<1x128xf32>
    %3 = vector.shape_cast %2 : vector<1x128xf32> to vector<1x1x128xf32>
    %c0_5 = arith.constant 0 : index
    %c0_6 = arith.constant 0 : index
    %4 = vector.load %arg3[%c0_5, %c0_6] : memref<1x128xf32, #tpu.memory_space<vmem>>, vector<1x128xf32>
    %5 = vector.shape_cast %4 : vector<1x128xf32> to vector<1x1x128xf32>
    %6 = vector.broadcast %3 : vector<1x1x128xf32> to vector<8x18x128xf32>
    %7 = arith.mulf %1, %6 : vector<8x18x128xf32>
    %8 = vector.broadcast %5 : vector<1x1x128xf32> to vector<8x18x128xf32>
    %9 = arith.addf %7, %8 : vector<8x18x128xf32>
    %cst = arith.constant 0.000000e+00 : f32
    %10 = vector.broadcast %cst : f32 to vector<8x18x128xf32>
    %11 = arith.maximumf %9, %10 : vector<8x18x128xf32>
    %12 = tpu.iota {dimensions = array<i32: 0>} : vector<18x1xi32>
    %c1_i32 = arith.constant 1 : i32
    %13 = vector.broadcast %c1_i32 : i32 to vector<18x1xi32>
    %14 = arith.cmpi sge, %12, %13 : vector<18x1xi32>
    %c17_i32 = arith.constant 17 : i32
    %15 = vector.broadcast %c17_i32 : i32 to vector<18x1xi32>
    %16 = arith.cmpi slt, %12, %15 : vector<18x1xi32>
    %17 = arith.andi %14, %16 : vector<18x1xi1>
    %cst_7 = arith.constant 0.000000e+00 : f32
    %18 = vector.shape_cast %17 : vector<18x1xi1> to vector<1x18x1xi1>
    %19 = vector.broadcast %18 : vector<1x18x1xi1> to vector<8x18x128xi1>
    %20 = vector.broadcast %cst_7 : f32 to vector<8x18x128xf32>
    %21 = arith.select %19, %11, %20 : vector<8x18x128xi1>, vector<8x18x128xf32>
    %c1 = arith.constant 1 : index
    %c0_8 = arith.constant 0 : index
    %c0_9 = arith.constant 0 : index
    %22 = vector.load %arg7[%c1, %c0_8, %c0_9] : memref<10x18x128xf32, #tpu.memory_space<vmem>>, vector<8x18x128xf32>
    tpu.vector_store %arg7[%c1, %c0_8, %c0_9], %21 {strides = array<i32>} : memref<10x18x128xf32, #tpu.memory_space<vmem>>, vector<8x18x128xf32>,
    %c1_10 = arith.constant 1 : index
    %c0_11 = arith.constant 0 : index
    %c0_12 = arith.constant 0 : index
    %23 = vector.load %arg7[%c1_10, %c0_11, %c0_12] : memref<10x18x128xf32, #tpu.memory_space<vmem>>, vector<1x18x128xf32>
    %24 = vector.shape_cast %23 : vector<1x18x128xf32> to vector<18x128xf32>
    %c0_13 = arith.constant 0 : index
    %c0_14 = arith.constant 0 : index
    %c0_15 = arith.constant 0 : index
    %25 = vector.load %arg7[%c0_13, %c0_14, %c0_15] : memref<10x18x128xf32, #tpu.memory_space<vmem>>, vector<1x18x128xf32>
    %26 = vector.shape_cast %25 : vector<1x18x128xf32> to vector<18x128xf32>
    %27 = vector.shape_cast %24 : vector<18x128xf32> to vector<1x18x128xf32>
    tpu.vector_store %arg7[%c0_13, %c0_14, %c0_15], %27 {strides = array<i32>} : memref<10x18x128xf32, #tpu.memory_space<vmem>>, vector<1x18x128xf32>,
    %c8 = arith.constant 8 : index
    %c0_16 = arith.constant 0 : index
    %c0_17 = arith.constant 0 : index
    %28 = vector.load %arg7[%c8, %c0_16, %c0_17] : memref<10x18x128xf32, #tpu.memory_space<vmem>>, vector<1x18x128xf32>
    %29 = vector.shape_cast %28 : vector<1x18x128xf32> to vector<18x128xf32>
    %c9 = arith.constant 9 : index
    %c0_18 = arith.constant 0 : index
    %c0_19 = arith.constant 0 : index
    %30 = vector.load %arg7[%c9, %c0_18, %c0_19] : memref<10x18x128xf32, #tpu.memory_space<vmem>>, vector<1x18x128xf32>
    %31 = vector.shape_cast %30 : vector<1x18x128xf32> to vector<18x128xf32>
    %32 = vector.shape_cast %29 : vector<18x128xf32> to vector<1x18x128xf32>
    tpu.vector_store %arg7[%c9, %c0_18, %c0_19], %32 {strides = array<i32>} : memref<10x18x128xf32, #tpu.memory_space<vmem>>, vector<1x18x128xf32>,
    %c0_20 = arith.constant 0 : index
    %c0_21 = arith.constant 0 : index
    %c0_22 = arith.constant 0 : index
    %33 = vector.load %arg7[%c0_20, %c0_21, %c0_22] : memref<10x18x128xf32, #tpu.memory_space<vmem>>, vector<10x16x128xf32>
    %34 = vector.shape_cast %33 : vector<10x16x128xf32> to vector<160x128xf32>
    %c0_23 = arith.constant 0 : index
    %c0_24 = arith.constant 0 : index
    %35 = vector.load %arg8[%c0_23, %c0_24] : memref<160x384xf32, #tpu.memory_space<vmem>>, vector<160x128xf32>
    tpu.vector_store %arg8[%c0_23, %c0_24], %34 {strides = array<i32>} : memref<160x384xf32, #tpu.memory_space<vmem>>, vector<160x128xf32>,
    %c0_25 = arith.constant 0 : index
    %c1_26 = arith.constant 1 : index
    %c0_27 = arith.constant 0 : index
    %36 = vector.load %arg7[%c0_25, %c1_26, %c0_27] : memref<10x18x128xf32, #tpu.memory_space<vmem>>, vector<10x16x128xf32>
    %37 = vector.shape_cast %36 : vector<10x16x128xf32> to vector<160x128xf32>
    %c0_28 = arith.constant 0 : index
    %c128 = arith.constant 128 : index
    %38 = vector.load %arg8[%c0_28, %c128] : memref<160x384xf32, #tpu.memory_space<vmem>>, vector<160x128xf32>
    tpu.vector_store %arg8[%c0_28, %c128], %37 {strides = array<i32>} : memref<160x384xf32, #tpu.memory_space<vmem>>, vector<160x128xf32>,
    %c0_29 = arith.constant 0 : index
    %c2 = arith.constant 2 : index
    %c0_30 = arith.constant 0 : index
    %39 = vector.load %arg7[%c0_29, %c2, %c0_30] : memref<10x18x128xf32, #tpu.memory_space<vmem>>, vector<10x16x128xf32>
    %40 = vector.shape_cast %39 : vector<10x16x128xf32> to vector<160x128xf32>
    %c0_31 = arith.constant 0 : index
    %c256 = arith.constant 256 : index
    %41 = vector.load %arg8[%c0_31, %c256] : memref<160x384xf32, #tpu.memory_space<vmem>>, vector<160x128xf32>
    tpu.vector_store %arg8[%c0_31, %c256], %40 {strides = array<i32>} : memref<160x384xf32, #tpu.memory_space<vmem>>, vector<160x128xf32>,
    %cst_32 = arith.constant 0.000000e+00 : f32
    %42 = vector.broadcast %cst_32 : f32 to vector<128x128xf32>
    %c0_33 = arith.constant 0 : index
    %c0_34 = arith.constant 0 : index
    %43 = vector.load %arg8[%c0_33, %c0_34] : memref<160x384xf32, #tpu.memory_space<vmem>>, vector<128x384xf32>
    %c0_35 = arith.constant 0 : index
    %c0_36 = arith.constant 0 : index
    %c0_37 = arith.constant 0 : index
    %44 = vector.load %arg4[%c0_35, %c0_36, %c0_37] : memref<3x384x128xf32, #tpu.memory_space<vmem>>, vector<1x384x128xf32>
    %45 = vector.shape_cast %44 : vector<1x384x128xf32> to vector<384x128xf32>
    %cst_38 = arith.constant dense<0.000000e+00> : vector<128x128xf32>
    %46 = tpu.matmul %43, %45, %cst_38 {dimension_numbers = #tpu.dot_dimension_numbers<[1], [0], [0], [1], [0, 0, 1, 1], [], []>} : vector<128x384xf32>, vector<384x128xf32>, vector<128x128xf32> -> vector<128x128xf32>
    %47 = arith.addf %42, %46 : vector<128x128xf32>
    %c16 = arith.constant 16 : index
    %c0_39 = arith.constant 0 : index
    %48 = vector.load %arg8[%c16, %c0_39] : memref<160x384xf32, #tpu.memory_space<vmem>>, vector<128x384xf32>
    %c1_40 = arith.constant 1 : index
    %c0_41 = arith.constant 0 : index
    %c0_42 = arith.constant 0 : index
    %49 = vector.load %arg4[%c1_40, %c0_41, %c0_42] : memref<3x384x128xf32, #tpu.memory_space<vmem>>, vector<1x384x128xf32>
    %50 = vector.shape_cast %49 : vector<1x384x128xf32> to vector<384x128xf32>
    %cst_43 = arith.constant dense<0.000000e+00> : vector<128x128xf32>
    %51 = tpu.matmul %48, %50, %cst_43 {dimension_numbers = #tpu.dot_dimension_numbers<[1], [0], [0], [1], [0, 0, 1, 1], [], []>} : vector<128x384xf32>, vector<384x128xf32>, vector<128x128xf32> -> vector<128x128xf32>
    %52 = arith.addf %47, %51 : vector<128x128xf32>
    %c32 = arith.constant 32 : index
    %c0_44 = arith.constant 0 : index
    %53 = vector.load %arg8[%c32, %c0_44] : memref<160x384xf32, #tpu.memory_space<vmem>>, vector<128x384xf32>
    %c2_45 = arith.constant 2 : index
    %c0_46 = arith.constant 0 : index
    %c0_47 = arith.constant 0 : index
    %54 = vector.load %arg4[%c2_45, %c0_46, %c0_47] : memref<3x384x128xf32, #tpu.memory_space<vmem>>, vector<1x384x128xf32>
    %55 = vector.shape_cast %54 : vector<1x384x128xf32> to vector<384x128xf32>
    %cst_48 = arith.constant dense<0.000000e+00> : vector<128x128xf32>
    %56 = tpu.matmul %53, %55, %cst_48 {dimension_numbers = #tpu.dot_dimension_numbers<[1], [0], [0], [1], [0, 0, 1, 1], [], []>} : vector<128x384xf32>, vector<384x128xf32>, vector<128x128xf32> -> vector<128x128xf32>
    %57 = arith.addf %52, %56 : vector<128x128xf32>
    %c0_49 = arith.constant 0 : index
    %c0_50 = arith.constant 0 : index
    %58 = vector.load %arg5[%c0_49, %c0_50] : memref<1x128xf32, #tpu.memory_space<vmem>>, vector<1x128xf32>
    %59 = vector.broadcast %58 : vector<1x128xf32> to vector<128x128xf32>
    %60 = arith.addf %57, %59 : vector<128x128xf32>
    %61 = vector.shape_cast %60 : vector<128x128xf32> to vector<1x128x128xf32>
    %c0_51 = arith.constant 0 : index
    %c0_52 = arith.constant 0 : index
    %c0_53 = arith.constant 0 : index
    %62 = vector.load %arg6[%c0_51, %c0_52, %c0_53] : memref<1x128x128xf32, #tpu.memory_space<vmem>>, vector<1x128x128xf32>
    tpu.vector_store %arg6[%c0_51, %c0_52, %c0_53], %61 {strides = array<i32>} : memref<1x128x128xf32, #tpu.memory_space<vmem>>, vector<1x128x128xf32>,
    return
  }
  func.func @transform_0(%arg0: i32) -> (i32, i32, i32, i32) {
    %c0_i32 = arith.constant 0 : i32
    %c0_i32_0 = arith.constant 0 : i32
    %c0_i32_1 = arith.constant 0 : i32
    %c0_i32_2 = arith.constant 0 : i32
    return %arg0, %c0_i32, %c0_i32_0, %c0_i32_1 : i32, i32, i32, i32
  }
  func.func @transform_1(%arg0: i32) -> (i32, i32) {
    %c0_i32 = arith.constant 0 : i32
    %c0_i32_0 = arith.constant 0 : i32
    %c0_i32_1 = arith.constant 0 : i32
    return %c0_i32, %c0_i32_0 : i32, i32
  }
  func.func @transform_2(%arg0: i32) -> (i32, i32) {
    %c0_i32 = arith.constant 0 : i32
    %c0_i32_0 = arith.constant 0 : i32
    %c0_i32_1 = arith.constant 0 : i32
    return %c0_i32, %c0_i32_0 : i32, i32
  }
  func.func @transform_3(%arg0: i32) -> (i32, i32, i32) {
    %c0_i32 = arith.constant 0 : i32
    %c0_i32_0 = arith.constant 0 : i32
    %c0_i32_1 = arith.constant 0 : i32
    %c0_i32_2 = arith.constant 0 : i32
    return %c0_i32, %c0_i32_0, %c0_i32_1 : i32, i32, i32
  }
  func.func @transform_4(%arg0: i32) -> (i32, i32) {
    %c0_i32 = arith.constant 0 : i32
    %c0_i32_0 = arith.constant 0 : i32
    %c0_i32_1 = arith.constant 0 : i32
    return %c0_i32, %c0_i32_0 : i32, i32
  }
  func.func @transform_5(%arg0: i32) -> (i32, i32, i32) {
    %c0_i32 = arith.constant 0 : i32
    %c0_i32_0 = arith.constant 0 : i32
    %c0_i32_1 = arith.constant 0 : i32
    return %arg0, %c0_i32, %c0_i32_0 : i32, i32, i32
  }
}

</mosaic_0001>

<bundles_post_ra>
// kernel: forward.1
= control target key start
LH: loop header
LB: loop body
LE: loop exit
PB: predicated region body
PF: predicated region fallthrough
CT: control target
= control target key end

     0   :  { %s2738_s18 = smov 0   ;;  %s3835_s0 = inlined_call_operand.vmem [shape: f32[2,8,18,128], index: 0, kind: input, shape index: {}]   ;;  %s3836_s1 = inlined_call_operand.vmem [shape: f32[1,128], index: 1, kind: input, shape index: {}]   ;;  %s3837_s2 = inlined_call_operand.vmem [shape: f32[1,128], index: 2, kind: input, shape index: {}]   ;;  %s3838_s3 = inlined_call_operand.vmem [shape: f32[3,384,128], index: 3, kind: input, shape index: {}]   ;;  %s3839_s4 = inlined_call_operand.vmem [shape: f32[1,128], index: 4, kind: input, shape index: {}]   ;;  %s3840_s5 = inlined_call_operand.vmem [shape: f32[2,128,128], index: 5, kind: output, shape index: {}]  }
   0x1 LB: > { %s1765_s19 = sadd.s32 4294967295, %s2706_s18   ;;  %p1769_p0 = scmp.ge.s32.totalorder %s2706_s18, 1  ;;  %s2706_s18 = sphi %s2738_s18, %s15_s18  }
   0x2   : > { %p187_p1 = scmp.lt.s32.totalorder %s2706_s18, 3 }
   0x4   : > { %p188_p2 = pnand %p1769_p0, %p187_p1 }
   0x5   : > { %v1791_v0 = vld [vmem:[%s3838_s3 + $0x200] sm:$0xff] (!%p188_p2)  ;;  %v1792_v1 = vld [vmem:[%s3838_s3 + $0x208] sm:$0xff] (!%p188_p2)  ;;  %p2766_p3 = scmp.lt.s32.totalorder (!%p188_p2), %s1765_s19, 1  ;;  %v1793_v9 = vld [vmem:[%s3838_s3 + $0x210] sm:$0xff] (!%p188_p2)  ;;  %v335_v31 = vlaneseq (!%p188_p2) }
   0x6   : > { %191 = sbr.rel (%p188_p2) target bundleno = 400 (0x190), region = 40  ;;  %v1807_v2 = vld [vmem:[%s3838_s3 + $0x280] sm:$0xff] (!%p188_p2)  ;;  %v2379_v3 = vpack.c.bf16 (!%p188_p2), %v1792_v1, %v1791_v0  ;;  %v1808_v4 = vld [vmem:[%s3838_s3 + $0x288] sm:$0xff] (!%p188_p2)  ;;  %v1794_v10 = vld [vmem:[%s3838_s3 + $0x218] sm:$0xff] (!%p188_p2) }
   0x7   : > { %v1775_v5 = vld [vmem:[%s3838_s3 + $0x180] sm:$0xff] (!%p188_p2)  ;;  %v1776_v6 = vld [vmem:[%s3838_s3 + $0x188] sm:$0xff] (!%p188_p2)  ;;  %v2411_v7 = vpack.c.bf16 (!%p188_p2), %v1808_v4, %v1807_v2  ;;  %v1809_v11 = vld [vmem:[%s3838_s3 + $0x290] sm:$0xff] (!%p188_p2)  ;;  %v2383_v12 = vpack.c.bf16 (!%p188_p2), %v1794_v10, %v1793_v9  ;;  %v2843_v41 = vshrl.u32 (!%p188_p2), %v335_v31, 7 }
   0x8   : > { %v2381_v8 = vpack.c.bf16 (!%p188_p2), %v1776_v6, %v1775_v5  ;;  %2380 = vmatprep.subr.bf16.mxu0 (!%p188_p2), %v2379_v3  ;;  %v1810_v13 = vld [vmem:[%s3838_s3 + $0x298] sm:$0xff] (!%p188_p2)  ;;  %v1777_v14 = vld [vmem:[%s3838_s3 + $0x190] sm:$0xff] (!%p188_p2)  ;;  %v1795_v18 = vld [vmem:[%s3838_s3 + $0x220] sm:$0xff] (!%p188_p2) }
   0x9   : > { %v1778_v15 = vld [vmem:[%s3838_s3 + $0x198] sm:$0xff] (!%p188_p2)  ;;  %2412 = vmatprep.subr.bf16.mxu1 (!%p188_p2), %v2411_v7  ;;  %v2415_v16 = vpack.c.bf16 (!%p188_p2), %v1810_v13, %v1809_v11  ;;  %v1796_v19 = vld [vmem:[%s3838_s3 + $0x228] sm:$0xff] (!%p188_p2)  ;;  %v1811_v20 = vld [vmem:[%s3838_s3 + $0x2a0] sm:$0xff] (!%p188_p2)  ;;  %v2879_v55 = vadd.s32 (!%p188_p2), 16, %v2843_v41  ;;  %vm339_vm0 = vcmp.ge.s32.totalorder (!%p188_p2), %v2843_v41, 1 }
   0xa   : > { %2382 = vmatpush3.bf16.msra.mxu0 (!%p188_p2), %v2381_v8  ;;  %v2385_v17 = vpack.c.bf16 (!%p188_p2), %v1778_v15, %v1777_v14  ;;  %2414 = vmatpush3.bf16.msra.mxu1 (!%p188_p2), %v2411_v7  ;;  %v2387_v21 = vpack.c.bf16 (!%p188_p2), %v1796_v19, %v1795_v18  ;;  %v1812_v22 = vld [vmem:[%s3838_s3 + $0x2a8] sm:$0xff] (!%p188_p2)  ;;  %v1779_v23 = vld [vmem:[%s3838_s3 + $0x1a0] sm:$0xff] (!%p188_p2)  ;;  %v1797_v26 = vld [vmem:[%s3838_s3 + $0x230] sm:$0xff] (!%p188_p2) }
   0xb   : > { %2384 = vmatprep.subr.bf16.mxu0 (!%p188_p2), %v2383_v12  ;;  %v1780_v24 = vld [vmem:[%s3838_s3 + $0x1a8] sm:$0xff] (!%p188_p2)  ;;  %2416 = vmatprep.subr.bf16.mxu1 (!%p188_p2), %v2415_v16  ;;  %v2419_v25 = vpack.c.bf16 (!%p188_p2), %v1812_v22, %v1811_v20  ;;  %v1798_v27 = vld [vmem:[%s3838_s3 + $0x238] sm:$0xff] (!%p188_p2)  ;;  %v1813_v28 = vld [vmem:[%s3838_s3 + $0x2b0] sm:$0xff] (!%p188_p2)  ;;  %vm344_vm1 = vcmp.lt.s32.totalorder (!%p188_p2), %v2879_v55, 17 }
   0xc   : > { %v1814_v29 = vld [vmem:[%s3838_s3 + $0x2b8] sm:$0xff] (!%p188_p2)  ;;  %v2389_v30 = vpack.c.bf16 (!%p188_p2), %v1780_v24, %v1779_v23  ;;  %v2391_v32 = vpack.c.bf16 (!%p188_p2), %v1798_v27, %v1797_v26  ;;  %v1781_v33 = vld [vmem:[%s3838_s3 + $0x1b0] sm:$0xff] (!%p188_p2)  ;;  %v1799_v36 = vld [vmem:[%s3838_s3 + $0x240] sm:$0xff] (!%p188_p2) }
   0xd   : > { %s3843_s19 = smov (!%p2766_p3, %s1765_s19), 1  ;;  %v1782_v34 = vld [vmem:[%s3838_s3 + $0x1b8] sm:$0xff]  ;;  %v2423_v35 = vpack.c.bf16 %v1814_v29, %v1813_v28  ;;  %v1800_v37 = vld [vmem:[%s3838_s3 + $0x248] sm:$0xff]  ;;  %v1815_v38 = vld [vmem:[%s3838_s3 + $0x2c0] sm:$0xff] }
   0xe   : > { %2386 = vmatpush3.bf16.msra.mxu0 %v2385_v17  ;;  %2418 = vmatpush3.bf16.msra.mxu1 %v2415_v16  ;;  %s2667_s23 = smul.u32 192, %s3843_s19  ;;  %v1816_v39 = vld [vmem:[%s3838_s3 + $0x2c8] sm:$0xff]  ;;  %v2393_v40 = vpack.c.bf16 %v1782_v34, %v1781_v33  ;;  %v2395_v42 = vpack.c.bf16 %v1800_v37, %v1799_v36  ;;  %v1783_v43 = vld [vmem:[%s3838_s3 + $0x1c0] sm:$0xff]  ;;  %v1801_v46 = vld [vmem:[%s3838_s3 + $0x250] sm:$0xff]  ;;  %s1874_s22 = sshll.u32 %s3843_s19, 7 }
   0xf   : > { %2388 = vmatprep.subr.bf16.mxu0 %v2387_v21  ;;  %2420 = vmatprep.subr.bf16.mxu1 %v2419_v25  ;;  %v1784_v44 = vld [vmem:[%s3838_s3 + $0x1c8] sm:$0xff]  ;;  %v2427_v45 = vpack.c.bf16 %v1816_v39, %v1815_v38  ;;  %v1802_v47 = vld [vmem:[%s3838_s3 + $0x258] sm:$0xff]  ;;  %v1817_v48 = vld [vmem:[%s3838_s3 + $0x2d0] sm:$0xff]  ;;  %s3810_s27 = scalar_lea.vmem %s3840_s5, %s1874_s22 }
  0x10   : > { %s2854_s14 = scalar_lea.vmem %s3835_s0, %s2667_s23  ;;  %v1818_v49 = vld [vmem:[%s3838_s3 + $0x2d8] sm:$0xff]  ;;  %v1785_v50 = vld [vmem:[%s3838_s3 + $0x1d0] sm:$0xff]  ;;  %v2397_v51 = vpack.c.bf16 %v1784_v44, %v1783_v43  ;;  %v2876_v54 = vld [vmem:[%s3836_s1] ss:$0 sm:$0xff]  ;;  %v2399_v56 = vpack.c.bf16 %v1802_v47, %v1801_v46 }
  0x11   : > { %v225_v52 = vld [vmem:[%s2854_s14] sm:$0xff]  ;;  %v226_v53 = vld [vmem:[%s2854_s14 + $0x8] sm:$0xff]  ;;  %v1786_v57 = vld [vmem:[%s3838_s3 + $0x1d8] sm:$0xff]  ;;  %v2431_v62 = vpack.c.bf16 %v1818_v49, %v1817_v48 }
  0x12   : > { %2390 = vmatpush3.bf16.msra.mxu0 %v2389_v30  ;;  %2422 = vmatpush3.bf16.msra.mxu1 %v2419_v25  ;;  %v2887_v58 = vld [vmem:[%s3837_s2] ss:$0 sm:$0xff]  ;;  %v257_v59 = vmul.f32 %v2876_v54, %v225_v52  ;;  %v258_v60 = vmul.f32 %v2876_v54, %v226_v53  ;;  %v227_v61 = vld [vmem:[%s2854_s14 + $0x10] sm:$0x3]  ;;  %v1804_v0 = vld [vmem:[%s3838_s3 + $0x268] sm:$0xff]  ;;  %v2401_v7 = vpack.c.bf16 %v1786_v57, %v1785_v50 }
  0x13   : > { %2392 = vmatprep.subr.bf16.mxu0 %v2391_v32  ;;  %2424 = vmatprep.subr.bf16.mxu1 %v2423_v35  ;;  %v1803_v63 = vld [vmem:[%s3838_s3 + $0x260] sm:$0xff]  ;;  %v259_v1 = vmul.f32 %v2876_v54, %v227_v61  ;;  %v1820_v3 = vld [vmem:[%s3838_s3 + $0x2e8] sm:$0xff]  ;;  %v228_v10 = vld [vmem:[%s2854_s14 + $0x18] sm:$0xff] }
  0x14   : > { %v1819_v2 = vld [vmem:[%s3838_s3 + $0x2e0] sm:$0xff]  ;;  %v287_v5 = vadd.f32 %v2887_v58, %v257_v59  ;;  %v288_v6 = vadd.f32 %v2887_v58, %v258_v60  ;;  %v2915_v8 = vld [vmem:[%s3838_s3 + $0x1e8] sm:$0xff]  ;;  %v2403_v12 = vpack.c.bf16 %v1804_v0, %v1803_v63  ;;  %v2925_v13 = vld [vmem:[%s3838_s3 + $0x270] sm:$0xff]  ;;  %v260_v16 = vmul.f32 %v2876_v54, %v228_v10 }
  0x15   : > { %v2908_v4 = vld [vmem:[%s3838_s3 + $0x1e0] sm:$0xff]  ;;  %v289_v9 = vadd.f32 %v2887_v58, %v259_v1  ;;  %v230_v17 = vld [vmem:[%s2854_s14 + $0x28] sm:$0x3]  ;;  %v2435_v18 = vpack.c.bf16 %v1820_v3, %v1819_v2  ;;  %v1806_v19 = vld [vmem:[%s3838_s3 + $0x278] sm:$0xff] }
  0x16   : > { %2394 = vmatpush3.bf16.msra.mxu0 %v2393_v40  ;;  %2426 = vmatpush3.bf16.msra.mxu1 %v2423_v35  ;;  %v229_v11 = vld [vmem:[%s2854_s14 + $0x20] sm:$0xff]  ;;  %v2927_v14 = vmax.f32 %v287_v5, 0.0  ;;  %v2929_v15 = vmax.f32 %v288_v6, 0.0  ;;  %v1821_v20 = vld [vmem:[%s3838_s3 + $0x2f0] sm:$0xff]  ;;  %v262_v23 = vmul.f32 %v2876_v54, %v230_v17  ;;  %v2405_v25 = vpack.c.bf16 %v2915_v8, %v2908_v4  ;;  %v1822_v26 = vld [vmem:[%s3838_s3 + $0x2f8] sm:$0xff] }
  0x17   : > { %2396 = vmatprep.subr.bf16.mxu0 %v2395_v42  ;;  %2428 = vmatprep.subr.bf16.mxu1 %v2427_v45  ;;  %v313_v21 = vmax.f32 %v289_v9, 0.0  ;;  %v261_v22 = vmul.f32 %v2876_v54, %v229_v11  ;;  %v231_v24 = vld [vmem:[%s2854_s14 + $0x30] sm:$0xff]  ;;  %v290_v28 = vadd.f32 %v2887_v58, %v260_v16  ;;  %v232_v29 = vld [vmem:[%s2854_s14 + $0x38] sm:$0xff]  ;;  %v233_v31 = vld [vmem:[%s2854_s14 + $0x40] sm:$0x3]  ;;  %v2407_v38 = vpack.c.bf16 %v1806_v19, %v2925_v13 }
  0x18   : > { %v354_v27 = vsel %vm339_vm0, %v2927_v14, 0.0  ;;  %380 = vst [vmem:[#allocation2 + $0x20] sm:$0xff] %v2929_v15  ;;  %v263_v30 = vmul.f32 %v2876_v54, %v231_v24  ;;  %407 = vst [vmem:[#allocation2 + $0x8] sm:$0xff] %v2929_v15  ;;  %v2959_v32 = vld [vmem:[%s3838_s3 + $0x1f0] sm:$0xff]  ;;  %v2964_v33 = vld [vmem:[%s3838_s3 + $0x1f8] sm:$0xff]  ;;  %v292_v36 = vadd.f32 %v2887_v58, %v262_v23  ;;  %v264_v37 = vmul.f32 %v2876_v54, %v232_v29 }
  0x19   : > { %379 = vst [vmem:[#allocation2 + $0x18] sm:$0xff] %v354_v27  ;;  %v356_v34 = vsel %vm344_vm1, %v313_v21, 0.0  ;;  %v291_v35 = vadd.f32 %v2887_v58, %v261_v22  ;;  %406 = vst [vmem:[#allocation2] sm:$0xff] %v354_v27  ;;  %v2975_v39 = vld [vmem:[%s3838_s3 + $0x80] sm:$0xff]  ;;  %v2980_v40 = vld [vmem:[%s3838_s3 + $0x88] sm:$0xff]  ;;  %v2987_v43 = vmax.f32 %v290_v28, 0.0  ;;  %v2439_v46 = vpack.c.bf16 %v1822_v26, %v1821_v20 }
  0x1a   : > { %2398 = vmatpush3.bf16.msra.mxu0 %v2397_v51  ;;  %2430 = vmatpush3.bf16.msra.mxu1 %v2427_v45  ;;  %381 = vst [vmem:[#allocation2 + $0x28] sm:$0x3] %v356_v34  ;;  %v2985_v42 = vld [vmem:[%s3838_s3 + $0x380] sm:$0xff]  ;;  %v293_v44 = vadd.f32 %v2887_v58, %v263_v30  ;;  %v265_v45 = vmul.f32 %v2876_v54, %v233_v31  ;;  %v2994_v47 = vld [vmem:[%s3838_s3 + $0x388] sm:$0xff]  ;;  %v316_v49 = vmax.f32 %v292_v36, 0.0  ;;  %v235_v52 = vld [vmem:[%s2854_s14 + $0x50] sm:$0xff] }
  0x1b   : > { %2400 = vmatprep.subr.bf16.mxu0 %v2399_v56  ;;  %2432 = vmatprep.subr.bf16.mxu1 %v2431_v62  ;;  %v2996_v48 = vmax.f32 %v291_v35, 0.0  ;;  %v294_v50 = vadd.f32 %v2887_v58, %v264_v37  ;;  %v234_v51 = vld [vmem:[%s2854_s14 + $0x48] sm:$0xff]  ;;  %v2409_v53 = vpack.c.bf16 %v2964_v33, %v2959_v32  ;;  %v3006_v56 = vld [vmem:[%s3838_s3] sm:$0xff]  ;;  %v357_v59 = vsel %vm339_vm0, %v2987_v43, 0.0  ;;  %v239_v11 = vld [vmem:[%s2854_s14 + $0x70] sm:$0x3] }
  0x1c   : > { %v3011_v57 = vld [vmem:[%s3838_s3 + $0x8] sm:$0xff]  ;;  %v3016_v60 = vmax.f32 %v293_v44, 0.0  ;;  %v295_v61 = vadd.f32 %v2887_v58, %v265_v45  ;;  %v2443_v63 = vpack.c.bf16 %v2980_v40, %v2975_v39  ;;  %v3025_v0 = vld [vmem:[%s3838_s3 + $0x300] sm:$0xff]  ;;  %382 = vst [vmem:[#allocation2 + $0x30] sm:$0xff] %v357_v59  ;;  %v359_v1 = vsel %vm344_vm1, %v316_v49, 0.0  ;;  %v3053_v16 = vld [vmem:[%s3838_s3 + $0x90] sm:$0xff] }
  0x1d   : > { %383 = vst [vmem:[#allocation2 + $0x38] sm:$0xff] %v2996_v48  ;;  %v3030_v2 = vmax.f32 %v294_v50, 0.0  ;;  %v266_v3 = vmul.f32 %v2876_v54, %v234_v51  ;;  %v237_v4 = vld [vmem:[%s2854_s14 + $0x60] sm:$0xff]  ;;  %v3037_v5 = vld [vmem:[%s3838_s3 + $0x308] sm:$0xff]  ;;  %384 = vst [vmem:[#allocation2 + $0x40] sm:$0x3] %v359_v1  ;;  %v267_v8 = vmul.f32 %v2876_v54, %v235_v52  ;;  %v2445_v13 = vpack.c.bf16 %v3011_v57, %v3006_v56 }
  0x1e   : > { %2402 = vmatpush3.bf16.msra.mxu0 %v2401_v7  ;;  %2434 = vmatpush3.bf16.msra.mxu1 %v2431_v62  ;;  %v236_v62 = vld [vmem:[%s2854_s14 + $0x58] sm:$0x3]  ;;  %v360_v6 = vsel %vm339_vm0, %v3016_v60, 0.0  ;;  %v319_v7 = vmax.f32 %v295_v61, 0.0  ;;  %v238_v10 = vld [vmem:[%s2854_s14 + $0x68] sm:$0xff]  ;;  %v269_v20 = vmul.f32 %v2876_v54, %v237_v4  ;;  %v2509_v28 = vpack.c.bf16 %v3037_v5, %v3025_v0  ;;  %v3088_v29 = vld [vmem:[%s3838_s3 + $0xa0] sm:$0xff] }
  0x1f   : > { %2404 = vmatprep.subr.bf16.mxu0 %v2403_v12  ;;  %2436 = vmatprep.subr.bf16.mxu1 %v2435_v18  ;;  %v268_v9 = vmul.f32 %v2876_v54, %v236_v62  ;;  %v2507_v12 = vpack.c.bf16 %v2994_v47, %v2985_v42  ;;  %v3058_v17 = vld [vmem:[%s3838_s3 + $0x98] sm:$0xff]  ;;  %385 = vst [vmem:[#allocation2 + $0x48] sm:$0xff] %v360_v6  ;;  %386 = vst [vmem:[#allocation2 + $0x50] sm:$0xff] %v3030_v2  ;;  %v3093_v30 = vld [vmem:[%s3838_s3 + $0xa8] sm:$0xff] }
  0x20   : > { %v296_v19 = vadd.f32 %v2887_v58, %v266_v3  ;;  %v3068_v21 = vld [vmem:[#allocation2 + $0x19] sm:$0xff]  ;;  %v362_v24 = vsel %vm344_vm1, %v319_v7, 0.0  ;;  %v270_v27 = vmul.f32 %v2876_v54, %v238_v10  ;;  %v3098_v31 = vld [vmem:[%s3838_s3 + $0x390] sm:$0xff]  ;;  %v299_v35 = vadd.f32 %v2887_v58, %v269_v20  ;;  %v3160_v1 = vld [vmem:[%s3838_s3 + $0x3a8] sm:$0xff] }
  0x21   : > { %v3070_v22 = vld [vmem:[#allocation2 + $0x1a] sm:$0xff]  ;;  %v298_v26 = vadd.f32 %v2887_v58, %v268_v9  ;;  %752 = vmatprep.mubr.f32.mxu0 %v3068_v21  ;;  %387 = vst [vmem:[#allocation2 + $0x58] sm:$0x3] %v362_v24  ;;  %v3108_v33 = vld [vmem:[%s3838_s3 + $0x310] sm:$0xff]  ;;  %v271_v36 = vmul.f32 %v2876_v54, %v239_v11  ;;  %v3115_v37 = vld [vmem:[#allocation2 + $0x22] sm:$0xff] }
  0x22   : > { %2406 = vmatpush3.bf16.msra.mxu0 %v2405_v25  ;;  %2438 = vmatpush3.bf16.msra.mxu1 %v2435_v18  ;;  %v3063_v18 = vld [vmem:[%s3838_s3 + $0x10] sm:$0xff]  ;;  %v3075_v23 = vld [vmem:[%s3838_s3 + $0x18] sm:$0xff]  ;;  %v297_v25 = vadd.f32 %v2887_v58, %v267_v8  ;;  %v3110_v34 = vmax.f32 %v296_v19, 0.0  ;;  %v300_v44 = vadd.f32 %v2887_v58, %v270_v27  ;;  %v3135_v50 = vmax.f32 %v299_v35, 0.0  ;;  %v241_v52 = vld [vmem:[%s2854_s14 + $0x80] sm:$0xff] }
  0x23   : > { %2408 = vmatprep.subr.bf16.mxu0 %v2407_v38  ;;  %2440 = vmatprep.subr.bf16.mxu1 %v2439_v46  ;;  %v3103_v32 = vld [vmem:[%s3838_s3 + $0x398] sm:$0xff]  ;;  %v2447_v38 = vpack.c.bf16 %v3058_v17, %v3053_v16  ;;  %v322_v42 = vmax.f32 %v298_v26, 0.0  ;;  %v2449_v47 = vpack.c.bf16 %v3075_v23, %v3063_v18  ;;  %v301_v51 = vadd.f32 %v2887_v58, %v271_v36  ;;  %v3155_v0 = vld [vmem:[%s3838_s3 + $0x3a0] sm:$0xff]  ;;  %v3172_v5 = vld [vmem:[%s3838_s3 + $0x28] sm:$0xff] }
  0x24   : > { %2243 = vmatprep.mubr.f32.mxu1 %v3070_v22  ;;  %v3122_v39 = vld [vmem:[%s3838_s3 + $0x318] sm:$0xff]  ;;  %v3124_v40 = vmax.f32 %v297_v25, 0.0  ;;  %v363_v49 = vsel %vm339_vm0, %v3110_v34, 0.0  ;;  %v2511_v61 = vpack.c.bf16 %v3103_v32, %v3098_v31  ;;  %v3167_v4 = vld [vmem:[%s3838_s3 + $0x20] sm:$0xff]  ;;  %v366_v6 = vsel %vm339_vm0, %v3135_v50, 0.0  ;;  %v3196_v56 = vld [vmem:[%s3838_s3 + $0xb0] sm:$0xff] }
  0x25   : > { %v240_v45 = vld [vmem:[%s2854_s14 + $0x78] sm:$0xff]  ;;  %388 = vst [vmem:[#allocation2 + $0x60] sm:$0xff] %v363_v49  ;;  %v365_v62 = vsel %vm344_vm1, %v322_v42, 0.0  ;;  %v325_v7 = vmax.f32 %v301_v51, 0.0  ;;  %v273_v8 = vmul.f32 %v2876_v54, %v241_v52  ;;  %v2451_v16 = vpack.c.bf16 %v3093_v30, %v3088_v29  ;;  %391 = vst [vmem:[#allocation2 + $0x78] sm:$0xff] %v366_v6  ;;  %v243_v23 = vld [vmem:[%s2854_s14 + $0x90] sm:$0xff] }
  0x26   : > { %2410 = vmatpush3.bf16.msra.mxu0 %v2409_v53  ;;  %2442 = vmatpush3.bf16.msra.mxu1 %v2439_v46  ;;  %v3128_v46 = vld [vmem:[#allocation2 + $0x21] sm:$0xff]  ;;  %v3143_v59 = vld [vmem:[#allocation2 + $0x32] sm:$0xff]  ;;  %389 = vst [vmem:[#allocation2 + $0x68] sm:$0xff] %v3124_v40  ;;  %v272_v3 = vmul.f32 %v2876_v54, %v240_v45  ;;  %390 = vst [vmem:[#allocation2 + $0x70] sm:$0x3] %v365_v62  ;;  %v2513_v17 = vpack.c.bf16 %v3122_v39, %v3108_v33 }
  0x27   : > { %2444 = vmatprep.subr.bf16.mxu1 %v2443_v63  ;;  %2508 = vmatprep.subr.bf16.mxu0 %v2507_v12  ;;  %v242_v53 = vld [vmem:[%s2854_s14 + $0x88] sm:$0x3]  ;;  %v3150_v63 = vmax.f32 %v300_v44, 0.0  ;;  %v3183_v10 = vld [vmem:[#allocation2 + $0x3a] sm:$0xff]  ;;  %v3185_v11 = vld [vmem:[#allocation2 + $0x31] sm:$0xff]  ;;  %v2515_v18 = vpack.c.bf16 %v3160_v1, %v3155_v0  ;;  %v303_v19 = vadd.f32 %v2887_v58, %v273_v8  ;;  %v275_v30 = vmul.f32 %v2876_v54, %v243_v23 }
  0x28   : > { %v274_v9 = vmul.f32 %v2876_v54, %v242_v53  ;;  %v3187_v12 = vld [vmem:[#allocation2 + $0x4a] sm:$0xff]  ;;  %v302_v57 = vadd.f32 %v2887_v58, %v272_v3  ;;  %v244_v24 = vld [vmem:[%s2854_s14 + $0x98] sm:$0xff]  ;;  %v245_v25 = vld [vmem:[%s2854_s14 + $0xa0] sm:$0x3]  ;;  %v2453_v33 = vpack.c.bf16 %v3172_v5, %v3167_v4 }
  0x29   : > { %2676 = vmatmul.mubr.msk.f32.vlgmr.msra.gmra.mrb[0].mxu0 %vm339_vm0, %v2927_v14  ;;  %2244 = vmatmul.mubr.f32.vlgmr.msra.gmra.mrb[0].mxu1 %v3115_v37  ;;  %392 = vst [vmem:[#allocation2 + $0x80] sm:$0xff] %v3150_v63  ;;  %v608_v26 = vld [vmem:[%s3838_s3 + $0xb8] sm:$0xff]  ;;  %v3217_v27 = vld [vmem:[%s3838_s3 + $0x320] sm:$0xff]  ;;  %v276_v31 = vmul.f32 %v2876_v54, %v244_v24  ;;  %v277_v32 = vmul.f32 %v2876_v54, %v245_v25  ;;  %v3234_v35 = vld [vmem:[%s3838_s3 + $0x30] sm:$0xff]  ;;  %v3236_v36 = vmax.f32 %v303_v19, 0.0 }
  0x2a   : > { %2510 = vmatpush3.bf16.msra.mxu0 %v2509_v28  ;;  %2446 = vmatpush3.bf16.msra.mxu1 %v2445_v13  ;;  %v368_v13 = vsel %vm344_vm1, %v325_v7, 0.0  ;;  %v304_v20 = vadd.f32 %v2887_v58, %v274_v9  ;;  %v1828_v28 = vld [vmem:[%s3838_s3 + $0x328] sm:$0xff]  ;;  %v3222_v29 = vmax.f32 %v302_v57, 0.0  ;;  %v1845_v39 = vld [vmem:[%s3838_s3 + $0x3b0] sm:$0xff]  ;;  %v1846_v42 = vld [vmem:[%s3838_s3 + $0x3b8] sm:$0xff]  ;;  %v305_v52 = vadd.f32 %v2887_v58, %v275_v30 }
  0x2b   : > { %757 = vmatprep.mubr.f32.mxu0 %v3128_v46  ;;  %2246 = vmatprep.mubr.f32.mxu1 %v3143_v59  ;;  %393 = vst [vmem:[#allocation2 + $0x88] sm:$0x3] %v368_v13  ;;  %v3245_v44 = vld [vmem:[#allocation2 + $0x52] sm:$0xff]  ;;  %v306_v53 = vadd.f32 %v2887_v58, %v276_v31  ;;  %v2455_v62 = vpack.c.bf16 %v608_v26, %v3196_v56  ;;  %v3266_v0 = vld [vmem:[%s3838_s3 + $0xc0] sm:$0xff]  ;;  %v610_v1 = vld [vmem:[%s3838_s3 + $0xc8] sm:$0xff] }
  0x2c   : > { %2448 = vmatprep.subr.bf16.mxu1 %v2447_v38  ;;  %2512 = vmatprep.subr.bf16.mxu0 %v2511_v61  ;;  %v328_v38 = vmax.f32 %v304_v20, 0.0  ;;  %v3247_v45 = vld [vmem:[#allocation2 + $0x39] sm:$0xff]  ;;  %v369_v51 = vsel %vm339_vm0, %v3222_v29, 0.0  ;;  %v2517_v3 = vpack.c.bf16 %v1828_v28, %v3217_v27  ;;  %395 = vst [vmem:[#allocation2 + $0x98] sm:$0xff] %v3236_v36  ;;  %v3278_v5 = vmax.f32 %v305_v52, 0.0  ;;  %v1829_v9 = vld [vmem:[%s3838_s3 + $0x330] sm:$0xff] }
  0x2d   : > { %758 = vmatmul.mubr.f32.gmra.mrb[2].mxu0 %v2929_v15  ;;  %2247 = vmatmul.mubr.f32.gmra.mrb[2].mxu1 %v3183_v10  ;;  %v3252_v49 = vld [vmem:[%s3838_s3 + $0x38] sm:$0xff]  ;;  %v3260_v61 = vld [vmem:[#allocation2 + $0x62] sm:$0xff]  ;;  %394 = vst [vmem:[#allocation2 + $0x90] sm:$0xff] %v369_v51  ;;  %v3280_v6 = vmax.f32 %v306_v53, 0.0  ;;  %v2519_v8 = vpack.c.bf16 %v1846_v42, %v1845_v39  ;;  %v247_v57 = vld [vmem:[%s2854_s14 + $0xb0] sm:$0xff]  ;;  %v2459_v28 = vpack.c.bf16 %v610_v1, %v3266_v0 }
  0x2e   : > { %762 = vmatprep.mubr.f32.mxu0 %v3185_v11  ;;  %2450 = vmatpush3.bf16.msra.mxu1 %v2449_v47  ;;  %v307_v47 = vadd.f32 %v2887_v58, %v277_v32  ;;  %v371_v4 = vsel %vm344_vm1, %v328_v38, 0.0  ;;  %v2457_v56 = vpack.c.bf16 %v3252_v49, %v3234_v35  ;;  %v3297_v19 = vld [vmem:[#allocation2 + $0x6a] sm:$0xff]  ;;  %v372_v23 = vsel %vm339_vm0, %v3278_v5, 0.0  ;;  %v593_v30 = vld [vmem:[%s3838_s3 + $0x40] sm:$0xff]  ;;  %v612_v35 = vld [vmem:[%s3838_s3 + $0xd8] sm:$0xff] }
  0x2f   : > { %2249 = vmatprep.mubr.f32.mxu1 %v3187_v12  ;;  %2452 = vmatprep.subr.bf16.mxu1 %v2451_v16  ;;  %396 = vst [vmem:[#allocation2 + $0xa0] sm:$0x3] %v371_v4  ;;  %v1830_v16 = vld [vmem:[%s3838_s3 + $0x338] sm:$0xff]  ;;  %v3299_v20 = vld [vmem:[#allocation2 + $0x49] sm:$0xff]  ;;  %398 = vst [vmem:[#allocation2 + $0xb0] sm:$0xff] %v3280_v6  ;;  %v279_v25 = vmul.f32 %v2876_v54, %v247_v57 }
  0x30   : > { %2514 = vmatpush3.bf16.msra.mxu0 %v2513_v17  ;;  %v331_v7 = vmax.f32 %v307_v47, 0.0  ;;  %v246_v17 = vld [vmem:[%s2854_s14 + $0xa8] sm:$0xff]  ;;  %v3309_v27 = vld [vmem:[#allocation2 + $0x7a] sm:$0xff]  ;;  %397 = vst [vmem:[#allocation2 + $0xa8] sm:$0xff] %v372_v23  ;;  %v2521_v32 = vpack.c.bf16 %v1830_v16, %v1829_v9  ;;  %v3333_v42 = vld [vmem:[%s3838_s3 + $0x50] sm:$0xff] }
  0x31   : > { %2677 = vmatmul.mubr.msk.f32.gmra.mrb[4].mxu0 %vm339_vm0, %v2987_v43  ;;  %2516 = vmatprep.subr.bf16.mxu0 %v2515_v18  ;;  %v278_v13 = vmul.f32 %v2876_v54, %v246_v17  ;;  %v248_v18 = vld [vmem:[%s2854_s14 + $0xb8] sm:$0x3]  ;;  %v594_v31 = vld [vmem:[%s3838_s3 + $0x48] sm:$0xff]  ;;  %v309_v38 = vadd.f32 %v2887_v58, %v279_v25  ;;  %v1847_v51 = vld [vmem:[%s3838_s3 + $0x3c0] sm:$0xff] }
  0x32   : > { %2250 = vmatmul.mubr.f32.gmra.mrb[4].mxu1 %v3245_v44  ;;  %767 = vmatprep.mubr.f32.mxu0 %v3247_v45  ;;  %v374_v24 = vsel %vm344_vm1, %v331_v7, 0.0  ;;  %v280_v26 = vmul.f32 %v2876_v54, %v248_v18  ;;  %v611_v54 = vld [vmem:[%s3838_s3 + $0xd0] sm:$0xff]  ;;  %v1848_v52 = vld [vmem:[%s3838_s3 + $0x3c8] sm:$0xff]  ;;  %v2461_v47 = vpack.c.bf16 %v594_v31, %v593_v30  ;;  %v596_v9 = vld [vmem:[%s3838_s3 + $0x58] sm:$0xff] }
  0x33   : > { %2454 = vmatpush3.bf16.msra.mxu1 %v2453_v33  ;;  %2252 = vmatprep.mubr.f32.mxu1 %v3260_v61  ;;  %399 = vst [vmem:[#allocation2 + $0xb8] sm:$0x3] %v374_v24  ;;  %v308_v33 = vadd.f32 %v2887_v58, %v278_v13  ;;  %v3347_v53 = vld [vmem:[#allocation2 + $0x82] sm:$0xff]  ;;  %v3351_v0 = vmax.f32 %v309_v38, 0.0  ;;  %v1849_v23 = vld [vmem:[%s3838_s3 + $0x3d0] sm:$0xff]  ;;  %v1850_v55 = vld [vmem:[%s3838_s3 + $0x3d8] sm:$0xff]  ;;  %v2465_v30 = vpack.c.bf16 %v596_v9, %v3333_v42 }
  0x34   : > { %2456 = vmatprep.subr.bf16.mxu1 %v2455_v62  ;;  %2518 = vmatpush3.bf16.msra.mxu0 %v2517_v3  ;;  %v310_v39 = vadd.f32 %v2887_v58, %v280_v26  ;;  %v1831_v58 = vld [vmem:[%s3838_s3 + $0x340] sm:$0xff]  ;;  %v3349_v62 = vld [vmem:[#allocation2 + $0x51] sm:$0xff]  ;;  %v2523_v3 = vpack.c.bf16 %v1848_v52, %v1847_v51  ;;  %v1832_v4 = vld [vmem:[%s3838_s3 + $0x348] sm:$0xff] }
  0x35   : > { %768 = vmatmul.mubr.f32.gmra.mrb[6].mxu0 %v2996_v48  ;;  %2520 = vmatprep.subr.bf16.mxu0 %v2519_v8  ;;  %v3335_v49 = vmax.f32 %v308_v33, 0.0  ;;  %v3356_v7 = vld [vmem:[#allocation2 + $0x92] sm:$0xff]  ;;  %v2463_v8 = vpack.c.bf16 %v612_v35, %v611_v54  ;;  %v2525_v17 = vpack.c.bf16 %v1832_v4, %v1831_v58  ;;  %v613_v57 = vld [vmem:[%s3838_s3 + $0xe0] sm:$0xff]  ;;  %v614_v13 = vld [vmem:[%s3838_s3 + $0xe8] sm:$0xff]  ;;  %401 = vst [vmem:[#allocation2 + $0xc8] sm:$0xff] %v3351_v0 }
  0x36   : > { %2253 = vmatmul.mubr.f32.gmra.mrb[6].mxu1 %v3297_v19  ;;  %772 = vmatprep.mubr.f32.mxu0 %v3299_v20  ;;  %v334_v1 = vmax.f32 %v310_v39, 0.0  ;;  %415 = vst [vmem:[#allocation2 + $0xe0] sm:$0xff] %v3351_v0  ;;  %v597_v24 = vld [vmem:[%s3838_s3 + $0x60] sm:$0xff]  ;;  %v1833_v25 = vld [vmem:[%s3838_s3 + $0x350] sm:$0xff]  ;;  %v1834_v26 = vld [vmem:[%s3838_s3 + $0x358] sm:$0xff]  ;;  %v2527_v33 = vpack.c.bf16 %v1850_v55, %v1849_v23  ;;  %v2467_v35 = vpack.c.bf16 %v614_v13, %v613_v57 }
  0x37   : > { %2458 = vmatpush3.bf16.msra.mxu1 %v2457_v56  ;;  %2255 = vmatprep.mubr.f32.mxu1 %v3309_v27  ;;  %v375_v16 = vsel %vm339_vm0, %v3335_v49, 0.0  ;;  %v405_v56 = vld [vmem:[#allocation2 + $0x28] sm:$0x3]  ;;  %v3403_v54 = vld [vmem:[#allocation2 + $0xaa] sm:$0xff]  ;;  %v616_v39 = vld [vmem:[%s3838_s3 + $0xf8] sm:$0xff]  ;;  %v2529_v42 = vpack.c.bf16 %v1834_v26, %v1833_v25 }
  0x38   : > { %2460 = vmatprep.subr.bf16.mxu1 %v2459_v28  ;;  %2522 = vmatpush3.bf16.msra.mxu0 %v2521_v32  ;;  %400 = vst [vmem:[#allocation2 + $0xc0] sm:$0xff] %v375_v16  ;;  %v377_v18 = vsel %vm344_vm1, %v334_v1, 0.0  ;;  %408 = vst [vmem:[#allocation2 + $0x10] sm:$0x3] %v405_v56  ;;  %v3395_v28 = vld [vmem:[#allocation2 + $0x9a] sm:$0xff]  ;;  %v598_v32 = vld [vmem:[%s3838_s3 + $0x68] sm:$0xff] }
  0x39   : > { %2678 = vmatmul.mubr.msk.f32.gmra.mrb[8].mxu0 %vm339_vm0, %v3016_v60  ;;  %2524 = vmatprep.subr.bf16.mxu0 %v2523_v3  ;;  %414 = vst [vmem:[#allocation2 + $0xd8] sm:$0xff] %v375_v16  ;;  %402 = vst [vmem:[#allocation2 + $0xd0] sm:$0x3] %v377_v18  ;;  %v3398_v31 = vld [vmem:[#allocation2 + $0x61] sm:$0xff]  ;;  %v615_v38 = vld [vmem:[%s3838_s3 + $0xf0] sm:$0xff]  ;;  %v2469_v9 = vpack.c.bf16 %v598_v32, %v597_v24 }
  0x3a   : > { %2256 = vmatmul.mubr.f32.gmra.mrb[8].mxu1 %v3347_v53  ;;  %777 = vmatprep.mubr.f32.mxu0 %v3349_v62  ;;  %v1851_v51 = vld [vmem:[%s3838_s3 + $0x3e0] sm:$0xff]  ;;  %v1852_v52 = vld [vmem:[%s3838_s3 + $0x3e8] sm:$0xff]  ;;  %v599_v1 = vld [vmem:[%s3838_s3 + $0x70] sm:$0xff]  ;;  %v2471_v57 = vpack.c.bf16 %v616_v39, %v615_v38 }
  0x3b   : > { %2462 = vmatpush3.bf16.msra.mxu1 %v2461_v47  ;;  %2258 = vmatprep.mubr.f32.mxu1 %v3356_v7  ;;  %v1835_v58 = vld [vmem:[%s3838_s3 + $0x360] sm:$0xff]  ;;  %v3423_v47 = vld [vmem:[#allocation2 + $0x69] sm:$0xff]  ;;  %v2531_v3 = vpack.c.bf16 %v1852_v52, %v1851_v51  ;;  %v600_v13 = vld [vmem:[%s3838_s3 + $0x78] sm:$0xff] }
  0x3c   : > { %2464 = vmatprep.subr.bf16.mxu1 %v2463_v8  ;;  %2526 = vmatpush3.bf16.msra.mxu0 %v2525_v17  ;;  %v1836_v4 = vld [vmem:[%s3838_s3 + $0x368] sm:$0xff]  ;;  %v3432_v8 = vld [vmem:[#allocation2 + $0xb2] sm:$0xff]  ;;  %v617_v18 = vld [vmem:[%s3838_s3 + $0x100] sm:$0xff] }
  0x3d   : > { %778 = vmatmul.mubr.f32.gmra.mrb[10].mxu0 %v3030_v2  ;;  %2528 = vmatprep.subr.bf16.mxu0 %v2527_v33  ;;  %v1853_v16 = vld [vmem:[%s3838_s3 + $0x3f0] sm:$0xff]  ;;  %v1854_v17 = vld [vmem:[%s3838_s3 + $0x3f8] sm:$0xff]  ;;  %v2533_v23 = vpack.c.bf16 %v1836_v4, %v1835_v58  ;;  %v618_v24 = vld [vmem:[%s3838_s3 + $0x108] sm:$0xff]  ;;  %v2473_v33 = vpack.c.bf16 %v600_v13, %v599_v1 }
  0x3e   : > { %2259 = vmatmul.mubr.f32.gmra.mrb[10].mxu1 %v3395_v28  ;;  %782 = vmatprep.mubr.f32.mxu0 %v3398_v31  ;;  %v2535_v55 = vpack.c.bf16 %v1854_v17, %v1853_v16  ;;  %v1837_v25 = vld [vmem:[%s3838_s3 + $0x370] sm:$0xff]  ;;  %v1838_v26 = vld [vmem:[%s3838_s3 + $0x378] sm:$0xff]  ;;  %v1856_v38 = vld [vmem:[%s3838_s3 + $0x408] sm:$0xff] }
  0x3f   : > { %2466 = vmatpush3.bf16.msra.mxu1 %v2465_v30  ;;  %2261 = vmatprep.mubr.f32.mxu1 %v3403_v54  ;;  %v3440_v56 = vld [vmem:[#allocation2 + $0xc2] sm:$0xff]  ;;  %v3462_v30 = vld [vmem:[#allocation2 + $0x79] sm:$0xff]  ;;  %v2537_v51 = vpack.c.bf16 %v1838_v26, %v1837_v25  ;;  %v619_v52 = vld [vmem:[%s3838_s3 + $0x110] sm:$0xff] }
  0x40   : > { %2468 = vmatprep.subr.bf16.mxu1 %v2467_v35  ;;  %2530 = vmatpush3.bf16.msra.mxu0 %v2529_v42  ;;  %v3465_v32 = vld [vmem:[#allocation2 + $0xca] sm:$0xff]  ;;  %v1855_v35 = vld [vmem:[%s3838_s3 + $0x400] sm:$0xff]  ;;  %v2475_v42 = vpack.c.bf16 %v618_v24, %v617_v18  ;;  %v620_v58 = vld [vmem:[%s3838_s3 + $0x118] sm:$0xff] }
  0x41   : > { %2679 = vmatmul.mubr.msk.f32.gmra.mrb[12].mxu0 %vm339_vm0, %v3110_v34  ;;  %2532 = vmatprep.subr.bf16.mxu0 %v2531_v3  ;;  %v457_v39 = vld [vmem:[#allocation2 + $0x1] sm:$0xff]  ;;  %v3480_v1 = vpack.c.bf16 %v1856_v38, %v1855_v35  ;;  %v458_v4 = vld [vmem:[#allocation2 + $0x9] sm:$0xff]  ;;  %v624_v24 = vld [vmem:[%s3838_s3 + $0x138] sm:$0xff] }
  0x42   : > { %2262 = vmatmul.mubr.f32.gmra.mrb[12].mxu1 %v3432_v8  ;;  %787 = vmatprep.mubr.f32.mxu0 %v3423_v47  ;;  %v3484_v3 = vld [vmem:[#allocation2 + $0x81] sm:$0xff]  ;;  %v412_v13 = vld [vmem:[#allocation2 + $0xd0] sm:$0x3] }
  0x43   : > { %2470 = vmatpush3.bf16.msra.mxu1 %v2469_v9  ;;  %2264 = vmatprep.mubr.f32.mxu1 %v3440_v56  ;;  %v2479_v9 = vpack.c.bf16 %v620_v58, %v619_v52  ;;  %v621_v16 = vld [vmem:[%s3838_s3 + $0x120] sm:$0xff]  ;;  %v622_v17 = vld [vmem:[%s3838_s3 + $0x128] sm:$0xff]  ;;  %416 = vst [vmem:[#allocation2 + $0xe8] sm:$0x3] %v412_v13  ;;  %v627_v38 = vld [vmem:[%s3838_s3 + $0x150] sm:$0xff] }
  0x44   : > { %2472 = vmatprep.subr.bf16.mxu1 %v2471_v57  ;;  %2534 = vmatpush3.bf16.msra.mxu0 %v2533_v23  ;;  %v3500_v57 = vld [vmem:[#allocation2 + $0x91] sm:$0xff]  ;;  %v2483_v18 = vpack.c.bf16 %v622_v17, %v621_v16  ;;  %v625_v26 = vld [vmem:[%s3838_s3 + $0x140] sm:$0xff] }
  0x45   : > { %788 = vmatmul.mubr.f32.gmra.mrb[14].mxu0 %v3124_v40  ;;  %2536 = vmatprep.subr.bf16.mxu0 %v2535_v55  ;;  %v623_v23 = vld [vmem:[%s3838_s3 + $0x130] sm:$0xff]  ;;  %v3512_v55 = vld [vmem:[#allocation2 + $0x99] sm:$0xff] }
  0x46   : > { %2265 = vmatmul.mubr.f32.gmra.mrb[14].mxu1 %v3465_v32  ;;  %792 = vmatprep.mubr.f32.mxu0 %v3462_v30  ;;  %v2487_v25 = vpack.c.bf16 %v624_v24, %v623_v23  ;;  %v631_v58 = vld [vmem:[%s3838_s3 + $0x170] sm:$0xff]  ;;  %v1858_v13 = vld [vmem:[%s3838_s3 + $0x418] sm:$0xff]  ;;  %v1859_v23 = vld [vmem:[%s3838_s3 + $0x420] sm:$0xff] }
  0x47   : > { %2474 = vmatpush3.bf16.msra.mxu1 %v2473_v33  ;;  %1042 = vmatprep.mubr.f32.mxu1 %v457_v39  ;;  %v626_v33 = vld [vmem:[%s3838_s3 + $0x148] sm:$0xff]  ;;  %v628_v39 = vld [vmem:[%s3838_s3 + $0x158] sm:$0xff]  ;;  %v1857_v17 = vld [vmem:[%s3838_s3 + $0x410] sm:$0xff] }
  0x48   : > { %2476 = vmatprep.subr.bf16.mxu1 %v2475_v42  ;;  %2538 = vmatpush3.bf16.msra.mxu0 %v2537_v51  ;;  %v2491_v35 = vpack.c.bf16 %v626_v33, %v625_v26  ;;  %v3556_v51 = vld [vmem:[#allocation2 + $0xc1] sm:$0xff]  ;;  %v1865_v26 = vld [vmem:[%s3838_s3 + $0x450] sm:$0xff]  ;;  %v1866_v33 = vld [vmem:[%s3838_s3 + $0x458] sm:$0xff] }
  0x49   : > { %2680 = vmatmul.mubr.msk.f32.gmra.mrb[16].mxu0 %vm339_vm0, %v3135_v50  ;;  %2540 = vmatprep.subr.bf16.mxu0 %v3480_v1  ;;  %v1860_v24 = vld [vmem:[%s3838_s3 + $0x428] sm:$0xff]  ;;  %v515_v41 = vld [vmem:[#allocation2 + $0xda] sm:$0xff] }
  0x4a   : > { %2681 = vmatmul.mubr.msk.f32.vlgmr.msra.gmra.mrb[16].mxu1 %vm339_vm0, %v2927_v14  ;;  %797 = vmatprep.mubr.f32.mxu0 %v3484_v3 }
  0x4b   : > { %2478 = vmatpush3.bf16.msra.mxu1 %v2475_v42  ;;  %1047 = vmatprep.mubr.f32.mxu1 %v458_v4  ;;  %v629_v42 = vld [vmem:[%s3838_s3 + $0x160] sm:$0xff]  ;;  %v632_v4 = vld [vmem:[%s3838_s3 + $0x178] sm:$0xff] }
  0x4c   : > { %2480 = vmatprep.subr.bf16.mxu1 %v2479_v9  ;;  %v2503_v16 = vpack.c.bf16 %v632_v4, %v631_v58 }
  0x4d   : > { %798 = vmatmul.mubr.f32.gmra.mrb[18].mxu0 %v3150_v63 }
  0x4e   : > { %1048 = vmatmul.mubr.f32.gmra.mrb[18].mxu1 %v2929_v15  ;;  %802 = vmatprep.mubr.f32.mxu0 %v3500_v57 }
  0x4f   : > { %1052 = vmatprep.mubr.f32.mxu1 %v3068_v21  ;;  %2482 = vmatpush3.bf16.msra.mxu1 %v2479_v9  ;;  %v3528_v21 = vld [vmem:[#allocation2 + $0xa9] sm:$0xff] }
  0x50   : > { %2484 = vmatprep.subr.bf16.mxu1 %v2483_v18  ;;  %v3568_v9 = vld [vmem:[#allocation2 + $0xc9] sm:$0xff] }
  0x51   : > { %2682 = vmatmul.mubr.msk.f32.gmra.mrb[20].mxu0 %vm339_vm0, %v3222_v29 }
  0x52   : > { %2683 = vmatmul.mubr.msk.f32.gmra.mrb[20].mxu1 %vm339_vm0, %v2927_v14  ;;  %807 = vmatprep.mubr.f32.mxu0 %v3512_v55  ;;  %v3540_v14 = vld [vmem:[#allocation2 + $0xb1] sm:$0xff] }
  0x53   : > { %1057 = vmatprep.mubr.f32.mxu1 %v3128_v46  ;;  %2486 = vmatpush3.bf16.msra.mxu1 %v2483_v18  ;;  %v2495_v46 = vpack.c.bf16 %v628_v39, %v627_v38  ;;  %v3588_v18 = vpack.c.bf16 %v1858_v13, %v1857_v17  ;;  %v1870_v38 = vld [vmem:[%s3838_s3 + $0x478] sm:$0xff] }
  0x54   : > { %2488 = vmatprep.subr.bf16.mxu1 %v2487_v25 }
  0x55   : > { %808 = vmatmul.mubr.f32.gmra.mrb[22].mxu0 %v3236_v36 }
  0x56   : > { %1058 = vmatmul.mubr.f32.gmra.mrb[22].mxu1 %v2929_v15  ;;  %812 = vmatprep.mubr.f32.mxu0 %v3528_v21  ;;  %v630_v15 = vld [vmem:[%s3838_s3 + $0x168] sm:$0xff] }
  0x57   : > { %1062 = vmatprep.mubr.f32.mxu1 %v3185_v11  ;;  %2490 = vmatpush3.bf16.msra.mxu1 %v2487_v25  ;;  %v2499_v52 = vpack.c.bf16 %v630_v15, %v629_v42  ;;  %v1862_v25 = vld [vmem:[%s3838_s3 + $0x438] sm:$0xff] }
  0x58   : > { %2492 = vmatprep.subr.bf16.mxu1 %v2491_v35 }
  0x59   : > { %2684 = vmatmul.mubr.msk.f32.gmra.mrb[24].mxu0 %vm339_vm0, %v3278_v5 }
  0x5a   : > { %2685 = vmatmul.mubr.msk.f32.gmra.mrb[24].mxu1 %vm339_vm0, %v2987_v43  ;;  %817 = vmatprep.mubr.f32.mxu0 %v3540_v14 }
  0x5b   : > { %1067 = vmatprep.mubr.f32.mxu1 %v3247_v45  ;;  %2494 = vmatpush3.bf16.msra.mxu1 %v2491_v35  ;;  %v1869_v35 = vld [vmem:[%s3838_s3 + $0x470] sm:$0xff] }
  0x5c   : > { %2496 = vmatprep.subr.bf16.mxu1 %v2495_v46 }
  0x5d   : > { %818 = vmatmul.mubr.f32.gmra.mrb[26].mxu0 %v3280_v6 }
  0x5e   : > { %1068 = vmatmul.mubr.f32.gmra.mrb[26].mxu1 %v2996_v48  ;;  %822 = vmatprep.mubr.f32.mxu0 %v3556_v51 }
  0x5f   : > { %1072 = vmatprep.mubr.f32.mxu1 %v3299_v20  ;;  %2498 = vmatpush3.bf16.msra.mxu1 %v2495_v46 }
  0x60   : > { %2500 = vmatprep.subr.bf16.mxu1 %v2499_v52 }
  0x61   : > { %2686 = vmatmul.mubr.msk.f32.gmra.mrb[28].mxu0 %vm339_vm0, %v3335_v49 }
  0x62   : > { %2687 = vmatmul.mubr.msk.f32.gmra.mrb[28].mxu1 %vm339_vm0, %v3016_v60  ;;  %827 = vmatprep.mubr.f32.mxu0 %v3568_v9 }
  0x63   : > { %1077 = vmatprep.mubr.f32.mxu1 %v3349_v62  ;;  %2502 = vmatpush3.bf16.msra.mxu1 %v2499_v52 }
  0x64   : > { %2504 = vmatprep.subr.bf16.mxu1 %v2503_v16 }
  0x65   : > { %828 = vmatmul.mubr.f32.gmra.mrb[30].mxu0 %v3351_v0 }
  0x66   : > { %1078 = vmatmul.mubr.f32.gmra.mrb[30].mxu1 %v3030_v2  ;;  %1429 = vmatprep.mubr.f32.mxu0 %v3185_v11  ;;  %v1861_v11 = vld [vmem:[%s3838_s3 + $0x430] sm:$0xff] }
  0x67   : > { %1082 = vmatprep.mubr.f32.mxu1 %v3398_v31  ;;  %2506 = vmatpush3.bf16.msra.mxu1 %v2503_v16 }
  0x68   : > { %2571 = vmatprep.subr.bf16.mxu1 %v3480_v1 }
  0x69   : > { %2688 = vmatmul.mubr.msk.f32.vlgmr.msra.gmra.mrb[32].mxu0 %vm339_vm0, %v2987_v43  ;;  %v3607_v43 = vpack.c.bf16 %v1860_v24, %v1859_v23 }
  0x6a   : > { %2689 = vmatmul.mubr.msk.f32.gmra.mrb[32].mxu1 %vm339_vm0, %v3110_v34  ;;  %2542 = vmatpush3.bf16.msra.mxu0 %v3480_v1 }
  0x6b   : > { %1087 = vmatprep.mubr.f32.mxu1 %v3423_v47  ;;  %1434 = vmatprep.mubr.f32.mxu0 %v3247_v45  ;;  %v3621_v45 = vpack.c.bf16 %v1862_v25, %v1861_v11 }
  0x6c   : > { %2544 = vmatprep.subr.bf16.mxu0 %v3588_v18 }
  0x6d   : > { %1435 = vmatmul.mubr.f32.gmra.mrb[34].mxu0 %v2996_v48  ;;  %v1863_v48 = vld [vmem:[%s3838_s3 + $0x440] sm:$0xff] }
  0x6e   : > { %1088 = vmatmul.mubr.f32.gmra.mrb[34].mxu1 %v3124_v40  ;;  %1439 = vmatprep.mubr.f32.mxu0 %v3299_v20  ;;  %v1864_v20 = vld [vmem:[%s3838_s3 + $0x448] sm:$0xff] }
  0x6f   : > { %1092 = vmatprep.mubr.f32.mxu1 %v3462_v30  ;;  %2546 = vmatpush3.bf16.msra.mxu0 %v3588_v18 }
  0x70   : > { %2548 = vmatprep.subr.bf16.mxu0 %v3607_v43 }
  0x71   : > { %2690 = vmatmul.mubr.msk.f32.gmra.mrb[36].mxu0 %vm339_vm0, %v3016_v60  ;;  %v3639_v60 = vpack.c.bf16 %v1864_v20, %v1863_v48 }
  0x72   : > { %2691 = vmatmul.mubr.msk.f32.gmra.mrb[36].mxu1 %vm339_vm0, %v3135_v50  ;;  %1444 = vmatprep.mubr.f32.mxu0 %v3349_v62  ;;  %v3653_v62 = vpack.c.bf16 %v1866_v33, %v1865_v26 }
  0x73   : > { %1097 = vmatprep.mubr.f32.mxu1 %v3484_v3  ;;  %2550 = vmatpush3.bf16.msra.mxu0 %v3607_v43 }
  0x74   : > { %2552 = vmatprep.subr.bf16.mxu0 %v3621_v45 }
  0x75   : > { %1445 = vmatmul.mubr.f32.gmra.mrb[38].mxu0 %v3030_v2  ;;  %v1867_v2 = vld [vmem:[%s3838_s3 + $0x460] sm:$0xff] }
  0x76   : > { %1098 = vmatmul.mubr.f32.gmra.mrb[38].mxu1 %v3150_v63  ;;  %1449 = vmatprep.mubr.f32.mxu0 %v3398_v31  ;;  %v1868_v31 = vld [vmem:[%s3838_s3 + $0x468] sm:$0xff] }
  0x77   : > { %1102 = vmatprep.mubr.f32.mxu1 %v3500_v57  ;;  %2554 = vmatpush3.bf16.msra.mxu0 %v3621_v45 }
  0x78   : > { %2556 = vmatprep.subr.bf16.mxu0 %v3639_v60 }
  0x79   : > { %2692 = vmatmul.mubr.msk.f32.gmra.mrb[40].mxu0 %vm339_vm0, %v3110_v34  ;;  %v3671_v34 = vpack.c.bf16 %v1868_v31, %v1867_v2 }
  0x7a   : > { %2693 = vmatmul.mubr.msk.f32.gmra.mrb[40].mxu1 %vm339_vm0, %v3222_v29  ;;  %1454 = vmatprep.mubr.f32.mxu0 %v3423_v47  ;;  %v2567_v47 = vpack.c.bf16 %v1870_v38, %v1869_v35 }
  0x7b   : > { %1107 = vmatprep.mubr.f32.mxu1 %v3512_v55  ;;  %2558 = vmatpush3.bf16.msra.mxu0 %v3639_v60 }
  0x7c   : > { %2560 = vmatprep.subr.bf16.mxu0 %v3653_v62 }
  0x7d   : > { %1455 = vmatmul.mubr.f32.gmra.mrb[42].mxu0 %v3124_v40  ;;  %v497_v40 = vld [vmem:[#allocation2 + $0x2] sm:$0xff] }
  0x7e   : > { %1108 = vmatmul.mubr.f32.gmra.mrb[42].mxu1 %v3236_v36  ;;  %1459 = vmatprep.mubr.f32.mxu0 %v3462_v30 }
  0x7f   : > { %1112 = vmatprep.mubr.f32.mxu1 %v3528_v21  ;;  %2562 = vmatpush3.bf16.msra.mxu0 %v3653_v62 }
  0x80   : > { %2564 = vmatprep.subr.bf16.mxu0 %v3671_v34 }
  0x81   : > { %2694 = vmatmul.mubr.msk.f32.gmra.mrb[44].mxu0 %vm339_vm0, %v3135_v50  ;;  %v498_v50 = vld [vmem:[#allocation2 + $0xa] sm:$0xff] }
  0x82   : > { %2695 = vmatmul.mubr.msk.f32.gmra.mrb[44].mxu1 %vm339_vm0, %v3278_v5  ;;  %1464 = vmatprep.mubr.f32.mxu0 %v3484_v3 }
  0x83   : > { %1117 = vmatprep.mubr.f32.mxu1 %v3540_v14  ;;  %2566 = vmatpush3.bf16.msra.mxu0 %v3671_v34 }
  0x84   : > { %2568 = vmatprep.subr.bf16.mxu0 %v2567_v47 }
  0x85   : > { %1465 = vmatmul.mubr.f32.gmra.mrb[46].mxu0 %v3150_v63 }
  0x86   : > { %1118 = vmatmul.mubr.f32.gmra.mrb[46].mxu1 %v3280_v6  ;;  %1469 = vmatprep.mubr.f32.mxu0 %v3500_v57 }
  0x87   : > { %2299 = vmatprep.mubr.f32.mxu1 %v497_v40  ;;  %2570 = vmatpush3.bf16.msra.mxu0 %v2567_v47 }
  0x89   : > { %2696 = vmatmul.mubr.msk.f32.gmra.mrb[48].mxu0 %vm339_vm0, %v3222_v29 }
  0x8a   : > { %2300 = vmatmul.mubr.f32.vlgmr.msra.gmra.mrb[0].mxu1 %v498_v50  ;;  %1474 = vmatprep.mubr.f32.mxu0 %v3512_v55 }
  0x8b   : > { %2579 = vmatpush3.bf16.msra.mxu1 %v3480_v1  ;;  %2302 = vmatprep.mubr.f32.mxu1 %v3070_v22  ;;  %v475_v22 = vld [vmem:[#allocation2 + $0xd9] sm:$0xff] }
  0x8c   : > { %2572 = vmatprep.subr.bf16.mxu1 %v3588_v18 }
  0x8d   : > { %1475 = vmatmul.mubr.f32.gmra.mrb[50].mxu0 %v3236_v36 }
  0x8e   : > { %2303 = vmatmul.mubr.f32.gmra.mrb[2].mxu1 %v3115_v37  ;;  %1479 = vmatprep.mubr.f32.mxu0 %v3528_v21  ;;  %v476_v37 = vld [vmem:[#allocation2 + $0xe1] sm:$0xff] }
  0x8f   : > { %2580 = vmatpush3.bf16.msra.mxu1 %v3588_v18  ;;  %2305 = vmatprep.mubr.f32.mxu1 %v3143_v59 }
  0x90   : > { %2573 = vmatprep.subr.bf16.mxu1 %v3607_v43 }
  0x91   : > { %2697 = vmatmul.mubr.msk.f32.gmra.mrb[52].mxu0 %vm339_vm0, %v3278_v5 }
  0x92   : > { %2306 = vmatmul.mubr.f32.gmra.mrb[4].mxu1 %v3183_v10  ;;  %1484 = vmatprep.mubr.f32.mxu0 %v3540_v14 }
  0x93   : > { %2581 = vmatpush3.bf16.msra.mxu1 %v3607_v43  ;;  %2308 = vmatprep.mubr.f32.mxu1 %v3187_v12 }
  0x94   : > { %2574 = vmatprep.subr.bf16.mxu1 %v3621_v45 }
  0x95   : > { %1485 = vmatmul.mubr.f32.gmra.mrb[54].mxu0 %v3280_v6 }
  0x96   : > { %2309 = vmatmul.mubr.f32.gmra.mrb[6].mxu1 %v3245_v44  ;;  %1489 = vmatprep.mubr.f32.mxu0 %v3556_v51 }
  0x97   : > { %2582 = vmatpush3.bf16.msra.mxu1 %v3621_v45  ;;  %2311 = vmatprep.mubr.f32.mxu1 %v3260_v61 }
  0x98   : > { %2575 = vmatprep.subr.bf16.mxu1 %v3639_v60 }
  0x99   : > { %2698 = vmatmul.mubr.msk.f32.gmra.mrb[56].mxu0 %vm339_vm0, %v3335_v49 }
  0x9a   : > { %2312 = vmatmul.mubr.f32.gmra.mrb[8].mxu1 %v3297_v19  ;;  %1494 = vmatprep.mubr.f32.mxu0 %v3568_v9 }
  0x9b   : > { %2583 = vmatpush3.bf16.msra.mxu1 %v3639_v60  ;;  %2314 = vmatprep.mubr.f32.mxu1 %v3309_v27 }
  0x9c   : > { %2576 = vmatprep.subr.bf16.mxu1 %v3653_v62 }
  0x9d   : > { %1495 = vmatmul.mubr.f32.gmra.mrb[58].mxu0 %v3351_v0 }
  0x9e   : > { %2315 = vmatmul.mubr.f32.gmra.mrb[10].mxu1 %v3347_v53  ;;  %1499 = vmatprep.mubr.f32.mxu0 %v475_v22 }
  0x9f   : > { %2584 = vmatpush3.bf16.msra.mxu1 %v3653_v62  ;;  %2317 = vmatprep.mubr.f32.mxu1 %v3356_v7 }
  0xa0   : > { %2577 = vmatprep.subr.bf16.mxu1 %v3671_v34 }
  0xa1   : > { %2699 = vmatmul.mubr.msk.f32.gmra.mrb[60].mxu0 %vm339_vm0, %v3335_v49 }
  0xa2   : > { %2318 = vmatmul.mubr.f32.gmra.mrb[12].mxu1 %v3395_v28  ;;  %1504 = vmatprep.mubr.f32.mxu0 %v476_v37 }
  0xa3   : > { %2585 = vmatpush3.bf16.msra.mxu1 %v3671_v34  ;;  %2320 = vmatprep.mubr.f32.mxu1 %v3403_v54 }
  0xa4   : > { %2578 = vmatprep.subr.bf16.mxu1 %v2567_v47 }
  0xa5   : > { %1505 = vmatmul.mubr.f32.gmra.mrb[62].mxu0 %v3351_v0 }
  0xa6   : > { %2321 = vmatmul.mubr.f32.gmra.mrb[14].mxu1 %v3432_v8  ;;  %2355 = vmatprep.mubr.f32.mxu0 %v3143_v59  ;;  %v516_v59 = vld [vmem:[#allocation2 + $0xe2] sm:$0xff] }
  0xa7   : > { %2586 = vmatpush3.bf16.msra.mxu1 %v2567_v47  ;;  %2367 = vmatprep.mubr.f32.mxu1 %v3356_v7 }
  0xa9   : > { %2356 = vmatmul.mubr.f32.vlgmr.msra.gmra.mrb[64].mxu0 %v3183_v10 }
  0xaa   : > { %2368 = vmatmul.mubr.f32.vlgmr.msra.gmra.mrb[8].mxu1 %v3395_v28  ;;  %2358 = vmatprep.mubr.f32.mxu0 %v3187_v12 }
  0xab   : > { %2370 = vmatprep.mubr.f32.mxu1 %v3403_v54 }
  0xad   : > { %2359 = vmatmul.mubr.f32.gmra.mrb[66].mxu0 %v3245_v44 }
  0xae   : > { %2371 = vmatmul.mubr.f32.gmra.mrb[10].mxu1 %v3432_v8  ;;  %2361 = vmatprep.mubr.f32.mxu0 %v3260_v61 }
  0xaf   : > { %2373 = vmatprep.mubr.f32.mxu1 %v3440_v56 }
  0xb1   : > { %2362 = vmatmul.mubr.f32.gmra.mrb[68].mxu0 %v3297_v19 }
  0xb2   : > { %2374 = vmatmul.mubr.f32.gmra.mrb[12].mxu1 %v3465_v32  ;;  %2364 = vmatprep.mubr.f32.mxu0 %v3309_v27 }
  0xb3   : > { %2376 = vmatprep.mubr.f32.mxu1 %v515_v41 }
  0xb5   : > { %2365 = vmatmul.mubr.f32.gmra.mrb[70].mxu0 %v3347_v53 }
  0xb6   : > { %2377 = vmatmul.mubr.f32.gmra.mrb[14].mxu1 %v516_v59 }
  0xfc   : > { %v1907_v63 = vpop.f32.mrb[0].mxu0 }
  0xfd   : > { %v1908_v10 = vpop.f32.mrb[1].mxu0 }
  0xfe   : > { %v1909_v12 = vadd.f32 %v1908_v10, %v1907_v63 }
 0x100   : > { %v1910_v29 = vpop.f32.mrb[2].mxu0 }
 0x101   : > { %v1911_v36 = vpop.f32.mrb[3].mxu0 }
 0x102   : > { %v1912_v44 = vadd.f32 %v1911_v36, %v1910_v29 }
 0x104   : > { %v1913_v61 = vpop.f32.mrb[4].mxu0 }
 0x105   : > { %v1914_v5 = vpop.f32.mrb[5].mxu0 }
 0x106   : > { %v1915_v6 = vadd.f32 %v1914_v5, %v1913_v61 }
 0x108   : > { %v1916_v49 = vpop.f32.mrb[6].mxu0 }
 0x109   : > { %v1917_v19 = vpop.f32.mrb[7].mxu0 }
 0x10a   : > { %v1918_v0 = vadd.f32 %v1917_v19, %v1916_v49 }
 0x10c   : > { %v1919_v7 = vpop.f32.mrb[8].mxu0 }
 0x10d   : > { %v1920_v28 = vpop.f32.mrb[9].mxu0 }
 0x10e   : > { %v1921_v27 = vadd.f32 %v1920_v28, %v1919_v7 }
 0x110   : > { %v1922_v54 = vpop.f32.mrb[10].mxu0 }
 0x111   : > { %v1923_v8 = vpop.f32.mrb[11].mxu0 }
 0x112   : > { %v1924_v56 = vadd.f32 %v1923_v8, %v1922_v54 }
 0x114   : > { %v1925_v53 = vpop.f32.mrb[12].mxu0 }
 0x115   : > { %v1926_v30 = vpop.f32.mrb[13].mxu0 }
 0x116   : > { %v1927_v32 = vadd.f32 %v1926_v30, %v1925_v53 }
 0x118   : > { %v1928_v1 = vpop.f32.mrb[14].mxu0 }
 0x119   : > { %v1929_v3 = vpop.f32.mrb[15].mxu0 }
 0x11a   : > { %v1930_v57 = vadd.f32 %v1929_v3, %v1928_v1 }
 0x11c   : > { %v1931_v55 = vpop.f32.mrb[16].mxu0 }
 0x11d   : > { %v2019_v21 = vpop.f32.mrb[16].mxu1  ;;  %v1932_v39 = vpop.f32.mrb[17].mxu0 }
 0x11e   : > { %v1933_v14 = vadd.f32 %v1932_v39, %v1931_v55  ;;  %v2020_v46 = vpop.f32.mrb[17].mxu1 }
 0x11f   : > { %v2021_v42 = vadd.f32 %v2020_v46, %v2019_v21 }
 0x120   : > { %v1934_v15 = vpop.f32.mrb[18].mxu0 }
 0x121   : > { %v2022_v51 = vpop.f32.mrb[18].mxu1  ;;  %v1935_v52 = vpop.f32.mrb[19].mxu0  ;;  %v3759_v58 = vadd.f32 %v2021_v42, %v1909_v12 }
 0x122   : > { %v1936_v4 = vadd.f32 %v1935_v52, %v1934_v15  ;;  %v2023_v9 = vpop.f32.mrb[19].mxu1 }
 0x123   : > { %v2024_v16 = vadd.f32 %v2023_v9, %v2022_v51 }
 0x124   : > { %v1937_v17 = vpop.f32.mrb[20].mxu0 }
 0x125   : > { %v2025_v13 = vpop.f32.mrb[20].mxu1  ;;  %v1938_v18 = vpop.f32.mrb[21].mxu0  ;;  %v3761_v23 = vadd.f32 %v2024_v16, %v1912_v44 }
 0x126   : > { %v1939_v24 = vadd.f32 %v1938_v18, %v1937_v17  ;;  %v2026_v43 = vpop.f32.mrb[21].mxu1 }
 0x127   : > { %v2027_v11 = vadd.f32 %v2026_v43, %v2025_v13 }
 0x128   : > { %v1940_v25 = vpop.f32.mrb[22].mxu0 }
 0x129   : > { %v2028_v45 = vpop.f32.mrb[22].mxu1  ;;  %v1941_v48 = vpop.f32.mrb[23].mxu0  ;;  %v3763_v20 = vadd.f32 %v2027_v11, %v1915_v6 }
 0x12a   : > { %v1942_v60 = vadd.f32 %v1941_v48, %v1940_v25  ;;  %v2029_v26 = vpop.f32.mrb[23].mxu1 }
 0x12b   : > { %v2030_v33 = vadd.f32 %v2029_v26, %v2028_v45 }
 0x12c   : > { %v1943_v62 = vpop.f32.mrb[24].mxu0 }
 0x12d   : > { %v2031_v2 = vpop.f32.mrb[24].mxu1  ;;  %v1944_v31 = vpop.f32.mrb[25].mxu0  ;;  %v3765_v34 = vadd.f32 %v2030_v33, %v1918_v0 }
 0x12e   : > { %v1945_v35 = vadd.f32 %v1944_v31, %v1943_v62  ;;  %v2032_v38 = vpop.f32.mrb[25].mxu1 }
 0x12f   : > { %v2033_v47 = vadd.f32 %v2032_v38, %v2031_v2 }
 0x130   : > { %v1946_v40 = vpop.f32.mrb[26].mxu0 }
 0x131   : > { %v2034_v50 = vpop.f32.mrb[26].mxu1  ;;  %v1947_v22 = vpop.f32.mrb[27].mxu0  ;;  %v3767_v37 = vadd.f32 %v2033_v47, %v1921_v27 }
 0x132   : > { %v1948_v41 = vadd.f32 %v1947_v22, %v1946_v40  ;;  %v2035_v59 = vpop.f32.mrb[27].mxu1 }
 0x133   : > { %v2036_v63 = vadd.f32 %v2035_v59, %v2034_v50 }
 0x134   : > { %v1949_v10 = vpop.f32.mrb[28].mxu0 }
 0x135   : > { %v2037_v12 = vpop.f32.mrb[28].mxu1  ;;  %v1950_v29 = vpop.f32.mrb[29].mxu0  ;;  %v3769_v36 = vadd.f32 %v2036_v63, %v1924_v56 }
 0x136   : > { %v1951_v44 = vadd.f32 %v1950_v29, %v1949_v10  ;;  %v2038_v61 = vpop.f32.mrb[29].mxu1 }
 0x137   : > { %v2039_v5 = vadd.f32 %v2038_v61, %v2037_v12 }
 0x138   : > { %v1952_v6 = vpop.f32.mrb[30].mxu0 }
 0x139   : > { %v2040_v49 = vpop.f32.mrb[30].mxu1  ;;  %v1953_v19 = vpop.f32.mrb[31].mxu0  ;;  %v3771_v0 = vadd.f32 %v2039_v5, %v1927_v32 }
 0x13a   : > { %v1954_v7 = vadd.f32 %v1953_v19, %v1952_v6  ;;  %v2041_v28 = vpop.f32.mrb[31].mxu1 }
 0x13b   : > { %v2042_v27 = vadd.f32 %v2041_v28, %v2040_v49 }
 0x13c   : > { %v2131_v54 = vpop.f32.mrb[32].mxu0 }
 0x13d   : > { %v2043_v8 = vpop.f32.mrb[32].mxu1  ;;  %v2132_v53 = vpop.f32.mrb[33].mxu0  ;;  %v3773_v30 = vadd.f32 %v2042_v27, %v1930_v57 }
 0x13e   : > { %v2044_v1 = vpop.f32.mrb[33].mxu1  ;;  %v3775_v3 = vadd.f32 %v2132_v53, %v2131_v54 }
 0x13f   : > { %v2045_v56 = vadd.f32 %v2044_v1, %v2043_v8 }
 0x140   : > { %v2134_v55 = vpop.f32.mrb[34].mxu0 }
 0x141   : > { %v2622_v21 = vadd.f32 %v2045_v56, %v1933_v14  ;;  %v2046_v39 = vpop.f32.mrb[34].mxu1  ;;  %v2135_v46 = vpop.f32.mrb[35].mxu0 }
 0x142   : > { %v2047_v42 = vpop.f32.mrb[35].mxu1  ;;  %v2136_v15 = vadd.f32 %v2135_v46, %v2134_v55 }
 0x143   : > { %v2048_v32 = vadd.f32 %v2047_v42, %v2046_v39 }
 0x144   : > { %v2137_v51 = vpop.f32.mrb[36].mxu0 }
 0x145   : > { %v2619_v52 = vadd.f32 %v2048_v32, %v1936_v4  ;;  %v2049_v9 = vpop.f32.mrb[36].mxu1  ;;  %v2138_v16 = vpop.f32.mrb[37].mxu0 }
 0x146   : > { %v2050_v17 = vpop.f32.mrb[37].mxu1  ;;  %v2139_v13 = vadd.f32 %v2138_v16, %v2137_v51 }
 0x147   : > { %v2051_v18 = vadd.f32 %v2050_v17, %v2049_v9 }
 0x148   : > { %v2140_v57 = vpop.f32.mrb[38].mxu0 }
 0x149   : > { %v3777_v43 = vadd.f32 %v2051_v18, %v1939_v24  ;;  %v2052_v11 = vpop.f32.mrb[38].mxu1  ;;  %v2141_v25 = vpop.f32.mrb[39].mxu0 }
 0x14a   : > { %v2053_v45 = vpop.f32.mrb[39].mxu1  ;;  %v2142_v48 = vadd.f32 %v2141_v25, %v2140_v57 }
 0x14b   : > { %v2054_v14 = vadd.f32 %v2053_v45, %v2052_v11 }
 0x14c   : > { %v2143_v26 = vpop.f32.mrb[40].mxu0 }
 0x14d   : > { %v3779_v33 = vadd.f32 %v2054_v14, %v1942_v60  ;;  %v2055_v62 = vpop.f32.mrb[40].mxu1  ;;  %v2144_v2 = vpop.f32.mrb[41].mxu0 }
 0x14e   : > { %v2056_v31 = vpop.f32.mrb[41].mxu1  ;;  %v2145_v4 = vadd.f32 %v2144_v2, %v2143_v26 }
 0x14f   : > { %v2057_v38 = vadd.f32 %v2056_v31, %v2055_v62 }
 0x150   : > { %v2146_v47 = vpop.f32.mrb[42].mxu0 }
 0x151   : > { %v3781_v40 = vadd.f32 %v2057_v38, %v1945_v35  ;;  %v2058_v50 = vpop.f32.mrb[42].mxu1  ;;  %v2147_v22 = vpop.f32.mrb[43].mxu0 }
 0x152   : > { %v2059_v24 = vpop.f32.mrb[43].mxu1  ;;  %v2148_v59 = vadd.f32 %v2147_v22, %v2146_v47 }
 0x153   : > { %v2060_v63 = vadd.f32 %v2059_v24, %v2058_v50 }
 0x154   : > { %v2149_v10 = vpop.f32.mrb[44].mxu0 }
 0x155   : > { %v2631_v12 = vadd.f32 %v2060_v63, %v1948_v41  ;;  %v2061_v29 = vpop.f32.mrb[44].mxu1  ;;  %v2150_v61 = vpop.f32.mrb[45].mxu0 }
 0x156   : > { %v2062_v5 = vpop.f32.mrb[45].mxu1  ;;  %v2151_v60 = vadd.f32 %v2150_v61, %v2149_v10 }
 0x157   : > { %v2063_v6 = vadd.f32 %v2062_v5, %v2061_v29 }
 0x158   : > { %v2152_v49 = vpop.f32.mrb[46].mxu0 }
 0x159   : > { %v2640_v19 = vadd.f32 %v2063_v6, %v1951_v44  ;;  %v2064_v28 = vpop.f32.mrb[46].mxu1  ;;  %v2153_v27 = vpop.f32.mrb[47].mxu0 }
 0x15a   : > { %v2065_v54 = vpop.f32.mrb[47].mxu1  ;;  %v2154_v8 = vadd.f32 %v2153_v27, %v2152_v49 }
 0x15b   : > { %v2066_v35 = vadd.f32 %v2065_v54, %v2064_v28 }
 0x15c   : > { %v2155_v53 = vpop.f32.mrb[48].mxu0 }
 0x15d   : > { %v2637_v1 = vadd.f32 %v2066_v35, %v1954_v7  ;;  %v2301_v56 = vpop.f32.mrb[0].mxu1  ;;  %v2156_v55 = vpop.f32.mrb[49].mxu0 }
 0x15e   : > { %v2588_v39 = vadd.f32 %v3761_v23, %v2301_v56  ;;  %v1189_v46 = vpop.f32.mrb[1].mxu1  ;;  %v2157_v41 = vadd.f32 %v2156_v55, %v2155_v53 }
 0x15f   : > { %v2592_v42 = vadd.f32 %v3759_v58, %v1189_v46 }
 0x160   : > { %v2158_v32 = vpop.f32.mrb[50].mxu0  ;;  %v2589_v51 = vadd.f32 %v2588_v39, %v2136_v15  ;;  %v2623_v9 = vadd.f32 %v2622_v21, %v2157_v41 }
 0x161   : > { %v2304_v16 = vpop.f32.mrb[2].mxu1  ;;  %v2159_v44 = vpop.f32.mrb[51].mxu0  ;;  %v2593_v17 = vadd.f32 %v2592_v42, %v3775_v3 }
 0x162   : > { %v2596_v18 = vadd.f32 %v3765_v34, %v2304_v16  ;;  %v1199_v57 = vpop.f32.mrb[3].mxu1  ;;  %v2160_v11 = vadd.f32 %v2159_v44, %v2158_v32 }
 0x163   : > { %v2600_v7 = vadd.f32 %v3763_v20, %v1199_v57 }
 0x164   : > { %v2161_v25 = vpop.f32.mrb[52].mxu0  ;;  %v2620_v45 = vadd.f32 %v2619_v52, %v2160_v11  ;;  %v2597_v23 = vadd.f32 %v2596_v18, %v2142_v48 }
 0x165   : > { %v2307_v14 = vpop.f32.mrb[4].mxu1  ;;  %v2162_v26 = vpop.f32.mrb[53].mxu0  ;;  %v2601_v62 = vadd.f32 %v2600_v7, %v2139_v13 }
 0x166   : > { %v2604_v58 = vadd.f32 %v3769_v36, %v2307_v14  ;;  %v1209_v15 = vpop.f32.mrb[5].mxu1  ;;  %v2163_v21 = vadd.f32 %v2162_v26, %v2161_v25 }
 0x167   : > { %v2608_v2 = vadd.f32 %v3767_v37, %v1209_v15 }
 0x168   : > { %v2164_v31 = vpop.f32.mrb[54].mxu0  ;;  %v2629_v3 = vadd.f32 %v3777_v43, %v2163_v21  ;;  %v2605_v34 = vadd.f32 %v2604_v58, %v2148_v59 }
 0x169   : > { %v2310_v38 = vpop.f32.mrb[6].mxu1  ;;  %v2165_v47 = vpop.f32.mrb[55].mxu0  ;;  %v3791_v50 = vadd.f32 %v2608_v2, %v2145_v4 }
 0x16a   : > { %v2612_v20 = vadd.f32 %v3773_v30, %v2310_v38  ;;  %v1219_v52 = vpop.f32.mrb[7].mxu1  ;;  %v2166_v48 = vadd.f32 %v2165_v47, %v2164_v31 }
 0x16b   : > { %v2616_v13 = vadd.f32 %v3771_v0, %v1219_v52 }
 0x16c   : > { %v2167_v22 = vpop.f32.mrb[56].mxu0  ;;  %v2626_v36 = vadd.f32 %v3779_v33, %v2166_v48  ;;  %v3796_v24 = vadd.f32 %v2612_v20, %v2154_v8 }
 0x16d   : > { %v2168_v37 = vpop.f32.mrb[57].mxu0  ;;  %v3798_v63 = vadd.f32 %v2616_v13, %v2151_v60  ;;  %v1871_v60 = vld [vmem:[%s3839_s4] ss:$0 sm:$0xff] }
 0x16e   : > { %v2169_v43 = vadd.f32 %v2168_v37, %v2167_v22 }
 0x170   : > { %v2170_v59 = vpop.f32.mrb[58].mxu0  ;;  %v2635_v4 = vadd.f32 %v3781_v40, %v2169_v43 }
 0x171   : > { %v2171_v10 = vpop.f32.mrb[59].mxu0 }
 0x172   : > { %v2172_v29 = vadd.f32 %v2171_v10, %v2170_v59 }
 0x174   : > { %v2173_v30 = vpop.f32.mrb[60].mxu0  ;;  %v2632_v61 = vadd.f32 %v2631_v12, %v2172_v29 }
 0x175   : > { %v2174_v5 = vpop.f32.mrb[61].mxu0 }
 0x176   : > { %v2175_v6 = vadd.f32 %v2174_v5, %v2173_v30 }
 0x178   : > { %v2176_v0 = vpop.f32.mrb[62].mxu0  ;;  %v3801_v49 = vadd.f32 %v2640_v19, %v2175_v6 }
 0x179   : > { %v2177_v33 = vpop.f32.mrb[63].mxu0 }
 0x17a   : > { %v2178_v28 = vadd.f32 %v2177_v33, %v2176_v0 }
 0x17c   : > { %v2357_v27 = vpop.f32.mrb[64].mxu0  ;;  %v2638_v54 = vadd.f32 %v2637_v1, %v2178_v28 }
 0x17d   : > { %v2590_v8 = vadd.f32 %v2589_v51, %v2357_v27  ;;  %v2369_v40 = vpop.f32.mrb[8].mxu1  ;;  %v1576_v35 = vpop.f32.mrb[65].mxu0 }
 0x17e   : > { %v2621_v12 = vadd.f32 %v2620_v45, %v2369_v40  ;;  %v2594_v19 = vadd.f32 %v2593_v17, %v1576_v35  ;;  %v1616_v53 = vpop.f32.mrb[9].mxu1 }
 0x17f   : > { %v1679_v56 = vadd.f32 %v2590_v8, %v1871_v60  ;;  %v2624_v55 = vadd.f32 %v2623_v9, %v1616_v53 }
 0x180   : > { %v1687_v39 = vadd.f32 %v2621_v12, %v1871_v60  ;;  %v1678_v46 = vadd.f32 %v2594_v19, %v1871_v60  ;;  %v2360_v1 = vpop.f32.mrb[66].mxu0 }
 0x181   : > { %1695 = vst [vmem:[%s3810_s27 + $0x8] sm:$0xff] %v1679_v56  ;;  %v1686_v41 = vadd.f32 %v2624_v55, %v1871_v60  ;;  %v2598_v42 = vadd.f32 %v2597_v23, %v2360_v1  ;;  %v2372_v32 = vpop.f32.mrb[10].mxu1  ;;  %v1586_v51 = vpop.f32.mrb[67].mxu0 }
 0x182   : > { %1703 = vst [vmem:[%s3810_s27 + $0x48] sm:$0xff] %v1687_v39  ;;  %1694 = vst [vmem:[%s3810_s27] sm:$0xff] %v1678_v46  ;;  %v2627_v16 = vadd.f32 %v2626_v36, %v2372_v32  ;;  %v2602_v44 = vadd.f32 %v2601_v62, %v1586_v51  ;;  %v1626_v17 = vpop.f32.mrb[11].mxu1 }
 0x183   : > { %1702 = vst [vmem:[%s3810_s27 + $0x40] sm:$0xff] %v1686_v41  ;;  %v1681_v18 = vadd.f32 %v2598_v42, %v1871_v60  ;;  %v2630_v9 = vadd.f32 %v2629_v3, %v1626_v17 }
 0x184   : > { %v1689_v57 = vadd.f32 %v2627_v16, %v1871_v60  ;;  %v1680_v11 = vadd.f32 %v2602_v44, %v1871_v60  ;;  %v2363_v7 = vpop.f32.mrb[68].mxu0 }
 0x185   : > { %1697 = vst [vmem:[%s3810_s27 + $0x18] sm:$0xff] %v1681_v18  ;;  %v1688_v25 = vadd.f32 %v2630_v9, %v1871_v60  ;;  %v2606_v45 = vadd.f32 %v2605_v34, %v2363_v7  ;;  %v2375_v23 = vpop.f32.mrb[12].mxu1  ;;  %v1596_v14 = vpop.f32.mrb[69].mxu0 }
 0x186   : > { %1705 = vst [vmem:[%s3810_s27 + $0x58] sm:$0xff] %v1689_v57  ;;  %1696 = vst [vmem:[%s3810_s27 + $0x10] sm:$0xff] %v1680_v11  ;;  %v2633_v26 = vadd.f32 %v2632_v61, %v2375_v23  ;;  %v2610_v62 = vadd.f32 %v3791_v50, %v1596_v14  ;;  %v1636_v58 = vpop.f32.mrb[13].mxu1 }
 0x187   : > { %1704 = vst [vmem:[%s3810_s27 + $0x50] sm:$0xff] %v1688_v25  ;;  %v1683_v15 = vadd.f32 %v2606_v45, %v1871_v60  ;;  %v2636_v21 = vadd.f32 %v2635_v4, %v1636_v58 }
 0x188   : > { %v1691_v2 = vadd.f32 %v2633_v26, %v1871_v60  ;;  %v1682_v31 = vadd.f32 %v2610_v62, %v1871_v60  ;;  %v2366_v3 = vpop.f32.mrb[70].mxu0 }
 0x189   : > { %1699 = vst [vmem:[%s3810_s27 + $0x28] sm:$0xff] %v1683_v15  ;;  %v1690_v34 = vadd.f32 %v2636_v21, %v1871_v60  ;;  %v2614_v38 = vadd.f32 %v3796_v24, %v2366_v3  ;;  %v2378_v47 = vpop.f32.mrb[14].mxu1  ;;  %v1606_v20 = vpop.f32.mrb[71].mxu0 }
 0x18a   : > { %1707 = vst [vmem:[%s3810_s27 + $0x68] sm:$0xff] %v1691_v2  ;;  %1698 = vst [vmem:[%s3810_s27 + $0x20] sm:$0xff] %v1682_v31  ;;  %v2639_v50 = vadd.f32 %v2638_v54, %v2378_v47  ;;  %v2618_v52 = vadd.f32 %v3798_v63, %v1606_v20  ;;  %v1646_v48 = vpop.f32.mrb[15].mxu1 }
 0x18b   : > { %1706 = vst [vmem:[%s3810_s27 + $0x60] sm:$0xff] %v1690_v34  ;;  %v1685_v13 = vadd.f32 %v2614_v38, %v1871_v60  ;;  %v2642_v22 = vadd.f32 %v3801_v49, %v1646_v48 }
 0x18c   : > { %v1693_v36 = vadd.f32 %v2639_v50, %v1871_v60  ;;  %v1684_v37 = vadd.f32 %v2618_v52, %v1871_v60 }
 0x18d   : > { %1701 = vst [vmem:[%s3810_s27 + $0x38] sm:$0xff] %v1685_v13  ;;  %v1692_v43 = vadd.f32 %v2642_v22, %v1871_v60 }
 0x18e   : > { %1709 = vst [vmem:[%s3810_s27 + $0x78] sm:$0xff] %v1693_v36  ;;  %1700 = vst [vmem:[%s3810_s27 + $0x30] sm:$0xff] %v1684_v37 }
 0x18f   : > { %1708 = vst [vmem:[%s3810_s27 + $0x70] sm:$0xff] %v1692_v43 }
 0x190 PF: > { %s15_s18 = sadd.s32 1, %s2706_s18  }
 0x191   : > { %p12_p4 = scmp.ge.s32.totalorder %s15_s18, 4  }
 0x193   :  { %14 = sbr.rel (!%p12_p4) target bundleno = 1 (0x1), region = 75 }

</bundles_post_ra>
